<compile_context>
chip_gen: v7x
topology: tpu7x:2x2x1
jax: 0.10.0
libtpu: 0.0.40
codegen_flags: <defaults>
</compile_context>

<pallas_src>
import functools

import jax
import jax.numpy as jnp
from jax.experimental import pallas as pl
from jax.experimental.pallas import tpu as pltpu

BN_EPS = 1e-5
LANE = 128


def _round_up(v, m):
    return ((v + m - 1) // m) * m


def _pad2(a, rows, cols, dtype):
    out = jnp.zeros((rows, cols), dtype)
    return out.at[: a.shape[0], : a.shape[1]].set(a.astype(dtype))


def _vmem_physical_bytes():
    """Generation-aware physical VMEM (falls back to the v7x 64 MiB minimum)."""
    try:
        info = pltpu.get_tpu_info()
        for attr in ("vmem_capacity_bytes", "vmem_bytes", "vmem_size_bytes"):
            v = getattr(info, attr, None)
            if v:
                return int(v)
    except Exception:
        pass
    return 64 << 20


# ----------------------------------------------------------------------------
# Kernel helpers
# ----------------------------------------------------------------------------
def _bn_from_moments(h, mean, ex2):
    # train-mode BatchNorm, gamma=1 / beta=0, biased variance = E[h^2] - mean^2
    var = jnp.maximum(ex2 - mean * mean, 0.0)
    return (h - mean) * jax.lax.rsqrt(var + BN_EPS)


def _fused_in(xt_ref, wcat_ref, bcat_ref, out_pad):
    # one MXU pass for conv1 and time_mlp: [x | t] @ block_diag(w1, wt)
    pre = jnp.dot(xt_ref[...], wcat_ref[...], preferred_element_type=jnp.float32)
    pre = jnp.maximum(pre + bcat_ref[...], 0.0)
    return pre[:, :out_pad], pre[:, out_pad:]


def _accum_moments(h, s_ref, q_ref, mask, is_partial):
    """Accumulate per-feature sum / sum-of-squares; mask only the partial tile."""
    if mask is None:
        s_ref[...] += jnp.sum(h, axis=0, keepdims=True)
        q_ref[...] += jnp.sum(h * h, axis=0, keepdims=True)
        return

    @pl.when(is_partial)
    def _masked():
        hm = h * mask
        s_ref[...] += jnp.sum(hm, axis=0, keepdims=True)
        q_ref[...] += jnp.sum(hm * h, axis=0, keepdims=True)

    @pl.when(jnp.logical_not(is_partial))
    def _full():
        s_ref[...] += jnp.sum(h, axis=0, keepdims=True)
        q_ref[...] += jnp.sum(h * h, axis=0, keepdims=True)


# ----------------------------------------------------------------------------
# Kernels
# ----------------------------------------------------------------------------
def _block_kernel_single(xt_ref, wcat_ref, bcat_ref, w2_ref, b2_ref,
                         wtr_ref, btr_ref, o_ref,
                         *, apply_bn, true_b, tile_b, out_pad):
    """Whole (padded) batch in one tile: single-phase, BN stats computed in place."""
    cdt = wcat_ref.dtype
    inv_b = 1.0 / float(true_b)

    h1, te = _fused_in(xt_ref, wcat_ref, bcat_ref, out_pad)

    mask = None
    if apply_bn and tile_b != true_b:
        row = jax.lax.broadcasted_iota(jnp.int32, (tile_b, 1), 0)
        mask = (row < true_b).astype(jnp.float32)

    def bn(h):
        hm = h if mask is None else h * mask
        mean = jnp.sum(hm, axis=0, keepdims=True) * inv_b
        ex2 = jnp.sum(hm * h, axis=0, keepdims=True) * inv_b
        return _bn_from_moments(h, mean, ex2)

    if apply_bn:
        h1 = bn(h1)
    h2 = jnp.maximum(
        jnp.dot((h1 + te).astype(cdt), w2_ref[...],
                preferred_element_type=jnp.float32) + b2_ref[...], 0.0)
    if apply_bn:
        h2 = bn(h2)
    o_ref[...] = (
        jnp.dot(h2.astype(cdt), wtr_ref[...], preferred_element_type=jnp.float32)
        + btr_ref[...]).astype(o_ref.dtype)


def _block_kernel_phased(xt_ref, wcat_ref, bcat_ref, w2_ref, b2_ref,
                         wtr_ref, btr_ref, o_ref,
                         s1_ref, q1_ref, s2_ref, q2_ref,
                         *, true_b, tile_b, out_pad, nbt, pad_rows):
    """Large-batch fallback: 3-phase full-batch BatchNorm with VMEM accumulators."""
    cdt = wcat_ref.dtype
    p = pl.program_id(0)        # 0 = BN1 stats, 1 = BN2 stats, 2 = finalize
    i = pl.program_id(1)        # batch tile
    inv_b = 1.0 / float(true_b)

    h1, te = _fused_in(xt_ref, wcat_ref, bcat_ref, out_pad)

    if pad_rows:
        row = jax.lax.broadcasted_iota(jnp.int32, (tile_b, 1), 0)
        mask = (row < (true_b - i * tile_b)).astype(jnp.float32)
        is_partial = i == nbt - 1
    else:
        mask = None
        is_partial = None

    @pl.when(jnp.logical_and(p == 0, i == 0))
    def _init():
        s1_ref[...] = jnp.zeros_like(s1_ref)
        q1_ref[...] = jnp.zeros_like(q1_ref)
        s2_ref[...] = jnp.zeros_like(s2_ref)
        q2_ref[...] = jnp.zeros_like(q2_ref)

    @pl.when(p == 0)
    def _stats1():
        _accum_moments(h1, s1_ref, q1_ref, mask, is_partial)

    @pl.when(p >= 1)
    def _phases_1_2():
        h1n = _bn_from_moments(h1, s1_ref[...] * inv_b, q1_ref[...] * inv_b)
        h2 = jnp.maximum(
            jnp.dot((h1n + te).astype(cdt), w2_ref[...],
                    preferred_element_type=jnp.float32) + b2_ref[...], 0.0)

        @pl.when(p == 1)
        def _stats2():
            _accum_moments(h2, s2_ref, q2_ref, mask, is_partial)

        @pl.when(p == 2)
        def _finalize():
            h2n = _bn_from_moments(h2, s2_ref[...] * inv_b, q2_ref[...] * inv_b)
            o_ref[...] = (
                jnp.dot(h2n.astype(cdt), wtr_ref[...],
                        preferred_element_type=jnp.float32)
                + btr_ref[...]).astype(o_ref.dtype)


# ----------------------------------------------------------------------------
# Wrapper
# ----------------------------------------------------------------------------
def block_forward(x, t, params, *, tile_b=None, compute_dtype=jnp.bfloat16,
                  out_dtype=jnp.float32):
    """Full Block forward as one Pallas kernel (auto-tiled, lane-padded)."""
    B, in_ch = x.shape
    tdim = t.shape[1]
    out_ch = params["w1"].shape[1]

    IN_PAD = _round_up(in_ch, LANE)
    TD_PAD = _round_up(tdim, LANE)
    OUT_PAD = _round_up(out_ch, LANE)
    CAT_PAD = IN_PAD + TD_PAD

    cb = jnp.dtype(compute_dtype).itemsize
    ob = jnp.dtype(out_dtype).itemsize
    row_align = 16 if cb < 4 else 8           # sublane packing for narrow dtypes

    # --- generation-aware VMEM budget -> auto tile size ----------------------
    phys = _vmem_physical_bytes()
    budget = int(phys * 0.75)                 # ~48 MiB v7x, ~96 MiB v5e/v6e

    weight_bytes = (CAT_PAD * 2 * OUT_PAD + 2 * OUT_PAD * OUT_PAD) * cb \
        + 4 * OUT_PAD * 4
    # per batch row: double-buffered xt tile + double-buffered out tile
    # + generous allowance for f32 in-kernel intermediates (h1, te, h2, ...)
    per_row = 2 * CAT_PAD * cb + 2 * OUT_PAD * ob + 8 * OUT_PAD * 4
    max_rows = max(row_align, (budget - weight_bytes - (2 << 20)) // per_row)
    max_rows = (max_rows // row_align) * row_align

    if tile_b is None:
        if B <= max_rows:
            TILE_B = _round_up(B, row_align)            # whole batch, one tile
        else:
            TILE_B = min(max_rows, _round_up(1024, row_align))
    else:
        TILE_B = min(_round_up(int(tile_b), row_align), _round_up(B, row_align))
        TILE_B = max(row_align, min(TILE_B, max_rows))

    B_PAD = _round_up(B, TILE_B)
    nbt = B_PAD // TILE_B

    apply_bn = (B != 1)                       # mirrors `if h.shape[0] != 1`
    phased = apply_bn and nbt > 1
    num_phases = 3 if phased else 1

    # --- pad + cast operands --------------------------------------------------
    xt = jnp.zeros((B_PAD, CAT_PAD), compute_dtype)
    xt = xt.at[:B, :in_ch].set(x.astype(compute_dtype))
    xt = xt.at[:B, IN_PAD:IN_PAD + tdim].set(t.astype(compute_dtype))

    wcat = jnp.zeros((CAT_PAD, 2 * OUT_PAD), compute_dtype)
    wcat = wcat.at[:in_ch, :out_ch].set(params["w1"].astype(compute_dtype))
    wcat = wcat.at[IN_PAD:IN_PAD + tdim, OUT_PAD:OUT_PAD + out_ch].set(
        params["wt"].astype(compute_dtype))

    bcat = jnp.zeros((1, 2 * OUT_PAD), jnp.float32)
    bcat = bcat.at[:, :out_ch].set(params["b1"].astype(jnp.float32).reshape(1, -1))
    bcat = bcat.at[:, OUT_PAD:OUT_PAD + out_ch].set(
        params["bt"].astype(jnp.float32).reshape(1, -1))

    w2 = _pad2(params["w2"], OUT_PAD, OUT_PAD, compute_dtype)
    b2 = _pad2(params["b2"].reshape(1, -1), 1, OUT_PAD, jnp.float32)
    wtr = _pad2(params["wtr"], OUT_PAD, OUT_PAD, compute_dtype)
    btr = _pad2(params["btr"].reshape(1, -1), 1, OUT_PAD, jnp.float32)

    # --- specs / kernel per mode ---------------------------------------------
    if not phased:
        kernel = functools.partial(_block_kernel_single, apply_bn=apply_bn,
                                   true_b=B, tile_b=TILE_B, out_pad=OUT_PAD)
        grid = (1,)
        amap = lambda i: (0, 0)
        in_specs = [
            pl.BlockSpec((TILE_B, CAT_PAD), amap),
            pl.BlockSpec((CAT_PAD, 2 * OUT_PAD), amap),
            pl.BlockSpec((1, 2 * OUT_PAD), amap),
            pl.BlockSpec((OUT_PAD, OUT_PAD), amap),
            pl.BlockSpec((1, OUT_PAD), amap),
            pl.BlockSpec((OUT_PAD, OUT_PAD), amap),
            pl.BlockSpec((1, OUT_PAD), amap),
        ]
        out_specs = pl.BlockSpec((TILE_B, OUT_PAD), amap)
        scratch = []
        dims = ("arbitrary",)
    else:
        kernel = functools.partial(_block_kernel_phased, true_b=B, tile_b=TILE_B,
                                   out_pad=OUT_PAD, nbt=nbt, pad_rows=(B_PAD != B))
        grid = (num_phases, nbt)
        cmap = lambda p, i: (0, 0)            # weights stay VMEM-resident
        xmap = lambda p, i: (i, 0)            # activations streamed every phase
        omap = lambda p, i: (i * (p // 2), 0) # only phase 2 writes the output
        try:  # deeper pipelining on the short per-tile compute (perf review)
            xt_spec = pl.BlockSpec((TILE_B, CAT_PAD), xmap,
                                   pipeline_mode=pl.Buffered(3))
        except Exception:
            xt_spec = pl.BlockSpec((TILE_B, CAT_PAD), xmap)
        in_specs = [
            xt_spec,
            pl.BlockSpec((CAT_PAD, 2 * OUT_PAD), cmap),
            pl.BlockSpec((1, 2 * OUT_PAD), cmap),
            pl.BlockSpec((OUT_PAD, OUT_PAD), cmap),
            pl.BlockSpec((1, OUT_PAD), cmap),
            pl.BlockSpec((OUT_PAD, OUT_PAD), cmap),
            pl.BlockSpec((1, OUT_PAD), cmap),
        ]
        out_specs = pl.BlockSpec((TILE_B, OUT_PAD), omap)
        scratch = [pltpu.VMEM((1, OUT_PAD), jnp.float32) for _ in range(4)]
        # BN stat accumulation couples tiles -> both axes sequential.
        dims = ("arbitrary", "arbitrary")

    # --- VMEM limit & cost estimate -------------------------------------------
    act_bytes = TILE_B * (2 * CAT_PAD * cb + 2 * OUT_PAD * ob + 8 * OUT_PAD * 4)
    vmem_needed = weight_bytes + act_bytes + (1 << 20)
    vmem_limit = int(min(max(vmem_needed * 5 // 4, 32 << 20), phys))

    act_reads = 3 if phased else 1
    mm_flops = 2 * B_PAD * (act_reads * CAT_PAD * 2 * OUT_PAD
                            + (2 if phased else 1) * OUT_PAD * OUT_PAD
                            + OUT_PAD * OUT_PAD)
    cost = pl.CostEstimate(
        flops=int(mm_flops),
        transcendentals=int(2 * OUT_PAD if apply_bn else 0),
        bytes_accessed=int(act_reads * B_PAD * CAT_PAD * cb + weight_bytes
                           + B_PAD * OUT_PAD * ob),
    )

    out_padded = pl.pallas_call(
        kernel,
        out_shape=jax.ShapeDtypeStruct((B_PAD, OUT_PAD), out_dtype),
        grid_spec=pltpu.PrefetchScalarGridSpec(
            num_scalar_prefetch=0,
            grid=grid,
            in_specs=in_specs,
            out_specs=out_specs,
            scratch_shapes=scratch,
        ),
        compiler_params=pltpu.CompilerParams(
            dimension_semantics=dims,
            vmem_limit_bytes=vmem_limit,
        ),
        cost_estimate=cost,
    )(xt, wcat, bcat, w2, b2, wtr, btr)

    return out_padded[:B, :out_ch]


# ----------------------------------------------------------------------------
# Parameter init + plain-JAX reference
# ----------------------------------------------------------------------------
def init_block_params(key, in_ch, out_ch, time_emb_dim, up=False):
    """Deterministic synthetic init (PyTorch-Linear-style uniform); weights stored (in, out)."""
    conv1_in = 2 * in_ch if up else in_ch

    def linear(k, fan_in, fan_out):
        kw, kb = jax.random.split(k)
        bound = 1.0 / jnp.sqrt(jnp.float32(fan_in))
        w = jax.random.uniform(kw, (fan_in, fan_out), jnp.float32, -bound, bound)
        b = jax.random.uniform(kb, (1, fan_out), jnp.float32, -bound, bound)
        return w, b

    k1, k2, k3, k4 = jax.random.split(key, 4)
    w1, b1 = linear(k1, conv1_in, out_ch)        # conv1
    wt, bt = linear(k2, time_emb_dim, out_ch)    # time_mlp
    w2, b2 = linear(k3, out_ch, out_ch)          # conv2
    wtr, btr = linear(k4, out_ch, out_ch)        # transform
    return dict(w1=w1, b1=b1, wt=wt, bt=bt, w2=w2, b2=b2, wtr=wtr, btr=btr)


def block_reference(x, t, params, *, apply_bn=True, compute_dtype=jnp.float32):
    """Plain-JAX reference (same matmul-input dtype policy as the kernel)."""
    def dot(a, w):
        return jnp.dot(a.astype(compute_dtype), w.astype(compute_dtype),
                       preferred_element_type=jnp.float32)

    def bn(h):
        m = jnp.mean(h, axis=0, keepdims=True)
        v = jnp.maximum(jnp.mean(h * h, axis=0, keepdims=True) - m * m, 0.0)
        return (h - m) * jax.lax.rsqrt(v + BN_EPS)

    h = jnp.maximum(dot(x, params["w1"]) + params["b1"], 0.0)
    if apply_bn:
        h = bn(h)
    te = jnp.maximum(dot(t, params["wt"]) + params["bt"], 0.0)
    h = h + te
    h = jnp.maximum(dot(h, params["w2"]) + params["b2"], 0.0)
    if apply_bn:
        h = bn(h)
    return dot(h, params["wtr"]) + params["btr"]


# TODO(synk): BatchNorm1d running_mean/running_var buffer updates (a training-time
# side effect in PyTorch) are not materialized; the forward output does not use them.

if __name__ == "__main__":
    in_ch, out_ch, time_emb_dim = 16, 32, 8
    key = jax.random.PRNGKey(0)
    kx, kt, kp = jax.random.split(key, 3)
    params = init_block_params(kp, in_ch, out_ch, time_emb_dim, up=False)

    B = 192
    x = jax.random.normal(kx, (B, in_ch), jnp.float32)
    t = jax.random.normal(kt, (B, time_emb_dim), jnp.float32)

    ref_f32 = block_reference(x, t, params, apply_bn=True, compute_dtype=jnp.float32)

    # 1) auto-sized single-tile (1-phase BN) path, f32 MXU inputs
    out = jax.block_until_ready(
        block_forward(x, t, params, compute_dtype=jnp.float32))
    assert out.shape == (B, out_ch)
    assert jnp.allclose(out, ref_f32, atol=5e-3, rtol=5e-3), "single-tile f32 mismatch"

    # 2) auto-sized single-tile path, bf16 MXU inputs (f32 accumulation)
    ref_bf16 = block_reference(x, t, params, apply_bn=True, compute_dtype=jnp.bfloat16)
    out_bf = jax.block_until_ready(
        block_forward(x, t, params, compute_dtype=jnp.bfloat16))
    assert jnp.allclose(out_bf, ref_bf16, atol=5e-2, rtol=5e-2), "single-tile bf16 mismatch"

    # 3) forced multi-tile phased BN path (exact tile multiple -> unmasked stats)
    out_ph = jax.block_until_ready(
        block_forward(x, t, params, tile_b=64, compute_dtype=jnp.float32))
    assert jnp.allclose(out_ph, ref_f32, atol=5e-3, rtol=5e-3), "phased f32 mismatch"

    # 4) forced multi-tile phased BN path with a partial last tile (masked stats)
    out_pp = jax.block_until_ready(
        block_forward(x, t, params, tile_b=80, compute_dtype=jnp.float32))
    assert jnp.allclose(out_pp, ref_f32, atol=5e-3, rtol=5e-3), "phased partial-tile mismatch"

    # 5) B == 1 -> BatchNorm statically skipped (matches PyTorch branch)
    ref_b1 = block_reference(x[:1], t[:1], params, apply_bn=False,
                             compute_dtype=jnp.float32)
    out_b1 = jax.block_until_ready(
        block_forward(x[:1], t[:1], params, compute_dtype=jnp.float32))
    assert jnp.allclose(out_b1, ref_b1, atol=5e-3, rtol=5e-3), "B=1 mismatch"

    print("KERNEL_OK")
</pallas_src>

<mosaic_0001>
module attributes {stable_mosaic.version = 11 : i64} {
  func.func @_block_kernel_single(%arg0: i32, %arg1: memref<192x256xf32, #tpu.memory_space<vmem>>, %arg2: memref<256x256xf32, #tpu.memory_space<vmem>>, %arg3: memref<1x256xf32, #tpu.memory_space<vmem>>, %arg4: memref<128x128xf32, #tpu.memory_space<vmem>>, %arg5: memref<1x128xf32, #tpu.memory_space<vmem>>, %arg6: memref<128x128xf32, #tpu.memory_space<vmem>>, %arg7: memref<1x128xf32, #tpu.memory_space<vmem>>, %arg8: memref<192x128xf32, #tpu.memory_space<vmem>>) attributes {dimension_semantics = [#tpu.dimension_semantics<arbitrary>], iteration_bounds = array<i64: 1>, scalar_prefetch = 0 : i64, scratch_operands = 0 : i64, tpu.core_type = #tpu.core_type<tc>, window_params = [{pipeline_mode = #tpu.pipeline_mode<synchronous>, transform_indices = @transform_0, window_bounds = array<i64: 192, 256>}, {pipeline_mode = #tpu.pipeline_mode<synchronous>, transform_indices = @transform_1, window_bounds = array<i64: 256, 256>}, {pipeline_mode = #tpu.pipeline_mode<synchronous>, transform_indices = @transform_2, window_bounds = array<i64: 1, 256>}, {pipeline_mode = #tpu.pipeline_mode<synchronous>, transform_indices = @transform_3, window_bounds = array<i64: 128, 128>}, {pipeline_mode = #tpu.pipeline_mode<synchronous>, transform_indices = @transform_4, window_bounds = array<i64: 1, 128>}, {pipeline_mode = #tpu.pipeline_mode<synchronous>, transform_indices = @transform_5, window_bounds = array<i64: 128, 128>}, {pipeline_mode = #tpu.pipeline_mode<synchronous>, transform_indices = @transform_6, window_bounds = array<i64: 1, 128>}, {pipeline_mode = #tpu.pipeline_mode<synchronous>, transform_indices = @transform_7, window_bounds = array<i64: 192, 128>}]} {
    %c0 = arith.constant 0 : index
    %c0_0 = arith.constant 0 : index
    %0 = vector.load %arg1[%c0, %c0_0] : memref<192x256xf32, #tpu.memory_space<vmem>>, vector<192x256xf32>
    %c0_1 = arith.constant 0 : index
    %c0_2 = arith.constant 0 : index
    %1 = vector.load %arg2[%c0_1, %c0_2] : memref<256x256xf32, #tpu.memory_space<vmem>>, vector<256x256xf32>
    %cst = arith.constant dense<0.000000e+00> : vector<192x256xf32>
    %2 = tpu.matmul %0, %1, %cst {dimension_numbers = #tpu.dot_dimension_numbers<[1], [0], [0], [1], [0, 0, 1, 1], [], []>} : vector<192x256xf32>, vector<256x256xf32>, vector<192x256xf32> -> vector<192x256xf32>
    %c0_3 = arith.constant 0 : index
    %c0_4 = arith.constant 0 : index
    %3 = vector.load %arg3[%c0_3, %c0_4] : memref<1x256xf32, #tpu.memory_space<vmem>>, vector<1x256xf32>
    %4 = vector.broadcast %3 : vector<1x256xf32> to vector<192x256xf32>
    %5 = arith.addf %2, %4 : vector<192x256xf32>
    %cst_5 = arith.constant 0.000000e+00 : f32
    %6 = vector.broadcast %cst_5 : f32 to vector<192x256xf32>
    %7 = arith.maximumf %5, %6 : vector<192x256xf32>
    %8 = vector.extract_strided_slice %7 {offsets = [0, 0], sizes = [192, 128], strides = [1, 1]} : vector<192x256xf32> to vector<192x128xf32>
    %9 = vector.extract_strided_slice %7 {offsets = [0, 128], sizes = [192, 128], strides = [1, 1]} : vector<192x256xf32> to vector<192x128xf32>
    %cst_6 = arith.constant dense<0.000000e+00> : vector<128xf32>
    %10 = vector.multi_reduction <add>, %8, %cst_6 [0] : vector<192x128xf32> to vector<128xf32>
    %11 = vector.shape_cast %10 : vector<128xf32> to vector<1x128xf32>
    %cst_7 = arith.constant 0.00520833349 : f32
    %12 = vector.broadcast %cst_7 : f32 to vector<1x128xf32>
    %13 = arith.mulf %11, %12 : vector<1x128xf32>
    %14 = arith.mulf %8, %8 : vector<192x128xf32>
    %cst_8 = arith.constant dense<0.000000e+00> : vector<128xf32>
    %15 = vector.multi_reduction <add>, %14, %cst_8 [0] : vector<192x128xf32> to vector<128xf32>
    %16 = vector.shape_cast %15 : vector<128xf32> to vector<1x128xf32>
    %cst_9 = arith.constant 0.00520833349 : f32
    %17 = vector.broadcast %cst_9 : f32 to vector<1x128xf32>
    %18 = arith.mulf %16, %17 : vector<1x128xf32>
    %19 = arith.mulf %13, %13 : vector<1x128xf32>
    %20 = arith.subf %18, %19 : vector<1x128xf32>
    %cst_10 = arith.constant 0.000000e+00 : f32
    %21 = vector.broadcast %cst_10 : f32 to vector<1x128xf32>
    %22 = arith.maximumf %20, %21 : vector<1x128xf32>
    %23 = vector.broadcast %13 : vector<1x128xf32> to vector<192x128xf32>
    %24 = arith.subf %8, %23 : vector<192x128xf32>
    %cst_11 = arith.constant 9.99999974E-6 : f32
    %25 = vector.broadcast %cst_11 : f32 to vector<1x128xf32>
    %26 = arith.addf %22, %25 : vector<1x128xf32>
    %27 = math.rsqrt %26 : vector<1x128xf32>
    %28 = vector.broadcast %27 : vector<1x128xf32> to vector<192x128xf32>
    %29 = arith.mulf %24, %28 : vector<192x128xf32>
    %30 = arith.addf %29, %9 : vector<192x128xf32>
    %c0_12 = arith.constant 0 : index
    %c0_13 = arith.constant 0 : index
    %31 = vector.load %arg4[%c0_12, %c0_13] : memref<128x128xf32, #tpu.memory_space<vmem>>, vector<128x128xf32>
    %cst_14 = arith.constant dense<0.000000e+00> : vector<192x128xf32>
    %32 = tpu.matmul %30, %31, %cst_14 {dimension_numbers = #tpu.dot_dimension_numbers<[1], [0], [0], [1], [0, 0, 1, 1], [], []>} : vector<192x128xf32>, vector<128x128xf32>, vector<192x128xf32> -> vector<192x128xf32>
    %c0_15 = arith.constant 0 : index
    %c0_16 = arith.constant 0 : index
    %33 = vector.load %arg5[%c0_15, %c0_16] : memref<1x128xf32, #tpu.memory_space<vmem>>, vector<1x128xf32>
    %34 = vector.broadcast %33 : vector<1x128xf32> to vector<192x128xf32>
    %35 = arith.addf %32, %34 : vector<192x128xf32>
    %cst_17 = arith.constant 0.000000e+00 : f32
    %36 = vector.broadcast %cst_17 : f32 to vector<192x128xf32>
    %37 = arith.maximumf %35, %36 : vector<192x128xf32>
    %cst_18 = arith.constant dense<0.000000e+00> : vector<128xf32>
    %38 = vector.multi_reduction <add>, %37, %cst_18 [0] : vector<192x128xf32> to vector<128xf32>
    %39 = vector.shape_cast %38 : vector<128xf32> to vector<1x128xf32>
    %cst_19 = arith.constant 0.00520833349 : f32
    %40 = vector.broadcast %cst_19 : f32 to vector<1x128xf32>
    %41 = arith.mulf %39, %40 : vector<1x128xf32>
    %42 = arith.mulf %37, %37 : vector<192x128xf32>
    %cst_20 = arith.constant dense<0.000000e+00> : vector<128xf32>
    %43 = vector.multi_reduction <add>, %42, %cst_20 [0] : vector<192x128xf32> to vector<128xf32>
    %44 = vector.shape_cast %43 : vector<128xf32> to vector<1x128xf32>
    %cst_21 = arith.constant 0.00520833349 : f32
    %45 = vector.broadcast %cst_21 : f32 to vector<1x128xf32>
    %46 = arith.mulf %44, %45 : vector<1x128xf32>
    %47 = arith.mulf %41, %41 : vector<1x128xf32>
    %48 = arith.subf %46, %47 : vector<1x128xf32>
    %cst_22 = arith.constant 0.000000e+00 : f32
    %49 = vector.broadcast %cst_22 : f32 to vector<1x128xf32>
    %50 = arith.maximumf %48, %49 : vector<1x128xf32>
    %51 = vector.broadcast %41 : vector<1x128xf32> to vector<192x128xf32>
    %52 = arith.subf %37, %51 : vector<192x128xf32>
    %cst_23 = arith.constant 9.99999974E-6 : f32
    %53 = vector.broadcast %cst_23 : f32 to vector<1x128xf32>
    %54 = arith.addf %50, %53 : vector<1x128xf32>
    %55 = math.rsqrt %54 : vector<1x128xf32>
    %56 = vector.broadcast %55 : vector<1x128xf32> to vector<192x128xf32>
    %57 = arith.mulf %52, %56 : vector<192x128xf32>
    %c0_24 = arith.constant 0 : index
    %c0_25 = arith.constant 0 : index
    %58 = vector.load %arg6[%c0_24, %c0_25] : memref<128x128xf32, #tpu.memory_space<vmem>>, vector<128x128xf32>
    %cst_26 = arith.constant dense<0.000000e+00> : vector<192x128xf32>
    %59 = tpu.matmul %57, %58, %cst_26 {dimension_numbers = #tpu.dot_dimension_numbers<[1], [0], [0], [1], [0, 0, 1, 1], [], []>} : vector<192x128xf32>, vector<128x128xf32>, vector<192x128xf32> -> vector<192x128xf32>
    %c0_27 = arith.constant 0 : index
    %c0_28 = arith.constant 0 : index
    %60 = vector.load %arg7[%c0_27, %c0_28] : memref<1x128xf32, #tpu.memory_space<vmem>>, vector<1x128xf32>
    %61 = vector.broadcast %60 : vector<1x128xf32> to vector<192x128xf32>
    %62 = arith.addf %59, %61 : vector<192x128xf32>
    %c0_29 = arith.constant 0 : index
    %c0_30 = arith.constant 0 : index
    %63 = vector.load %arg8[%c0_29, %c0_30] : memref<192x128xf32, #tpu.memory_space<vmem>>, vector<192x128xf32>
    tpu.vector_store %arg8[%c0_29, %c0_30], %62 {strides = array<i32>} : memref<192x128xf32, #tpu.memory_space<vmem>>, vector<192x128xf32>,
    return
  }
  func.func @transform_0(%arg0: i32) -> (i32, i32) {
    %c0_i32 = arith.constant 0 : i32
    %c0_i32_0 = arith.constant 0 : i32
    %c0_i32_1 = arith.constant 0 : i32
    return %c0_i32, %c0_i32_0 : i32, i32
  }
  func.func @transform_1(%arg0: i32) -> (i32, i32) {
    %c0_i32 = arith.constant 0 : i32
    %c0_i32_0 = arith.constant 0 : i32
    %c0_i32_1 = arith.constant 0 : i32
    return %c0_i32, %c0_i32_0 : i32, i32
  }
  func.func @transform_2(%arg0: i32) -> (i32, i32) {
    %c0_i32 = arith.constant 0 : i32
    %c0_i32_0 = arith.constant 0 : i32
    %c0_i32_1 = arith.constant 0 : i32
    return %c0_i32, %c0_i32_0 : i32, i32
  }
  func.func @transform_3(%arg0: i32) -> (i32, i32) {
    %c0_i32 = arith.constant 0 : i32
    %c0_i32_0 = arith.constant 0 : i32
    %c0_i32_1 = arith.constant 0 : i32
    return %c0_i32, %c0_i32_0 : i32, i32
  }
  func.func @transform_4(%arg0: i32) -> (i32, i32) {
    %c0_i32 = arith.constant 0 : i32
    %c0_i32_0 = arith.constant 0 : i32
    %c0_i32_1 = arith.constant 0 : i32
    return %c0_i32, %c0_i32_0 : i32, i32
  }
  func.func @transform_5(%arg0: i32) -> (i32, i32) {
    %c0_i32 = arith.constant 0 : i32
    %c0_i32_0 = arith.constant 0 : i32
    %c0_i32_1 = arith.constant 0 : i32
    return %c0_i32, %c0_i32_0 : i32, i32
  }
  func.func @transform_6(%arg0: i32) -> (i32, i32) {
    %c0_i32 = arith.constant 0 : i32
    %c0_i32_0 = arith.constant 0 : i32
    %c0_i32_1 = arith.constant 0 : i32
    return %c0_i32, %c0_i32_0 : i32, i32
  }
  func.func @transform_7(%arg0: i32) -> (i32, i32) {
    %c0_i32 = arith.constant 0 : i32
    %c0_i32_0 = arith.constant 0 : i32
    %c0_i32_1 = arith.constant 0 : i32
    return %c0_i32, %c0_i32_0 : i32, i32
  }
}

</mosaic_0001>

<bundles_post_ra>
// kernel: tpu_custom_call.1
= control target key start
LH: loop header
LB: loop body
LE: loop exit
PB: predicated region body
PF: predicated region fallthrough
CT: control target
= control target key end

     0   :  { %12 = vsyncpa [#allocation3], 0  ;;  %s2466_s0 = inlined_call_operand.hbm [shape: f32[192,256], index: 0, kind: input, shape index: {}]   ;;  %s2467_s1 = inlined_call_operand.hbm [shape: f32[256,256], index: 1, kind: input, shape index: {}]   ;;  %s2468_s2 = inlined_call_operand.vmem [shape: f32[1,256], index: 2, kind: input, shape index: {}]   ;;  %s2469_s3 = inlined_call_operand.hbm [shape: f32[128,128], index: 3, kind: input, shape index: {}]   ;;  %s2470_s4 = inlined_call_operand.vmem [shape: f32[1,128], index: 4, kind: input, shape index: {}]   ;;  %s2471_s5 = inlined_call_operand.hbm [shape: f32[128,128], index: 5, kind: input, shape index: {}]   ;;  %s2472_s6 = inlined_call_operand.vmem [shape: f32[1,128], index: 6, kind: input, shape index: {}]   ;;  %s2473_s7 = inlined_call_operand.hbm [shape: f32[192,128], index: 7, kind: output, shape index: {}]  }
   0x1   :  { %13 = vsyncpa [#allocation6], 0 }
   0x2   :  { %14 = vsyncpa [#allocation9], 0 }
   0x3   :  { %15 = vsyncpa [#allocation4], 0  ;;  %s1721_s24 = smov [#allocation5]   ;;  %s1722_s26 = smov [#allocation2]  }
   0x4   :  { %s33_s25 = sshll.u32 %s1721_s24, 4  ;;  %s21_s27 = sshll.u32 %s1722_s26, 4  ;;  %s34_s25 = int_to_ptr.vmem [resolvable:$true] %s33_s25  ;;  %s1770_s27 = int_to_ptr.vmem [resolvable:$true] %s21_s27 }
   0x5   :  { %s1603_s30 = scalar_lea.hbm %s2467_s1, 8192 }
   0x6   :  { %p1604_p0 = scmp.ne.s32.totalorder %s2467_s1, %s1603_s30  ;;  %p1607_p1 = scmp.lt.u32.totalorder %s1603_s30, %s2467_s1 }
   0x8   :  { %p1609_p2 = pnand %p1607_p1, %p1604_p0 }
   0xa   :  { %1612 = shalt.err (!%p1609_p2)
}
   0xb   :  { %s1613_s12 = scalar_lea.vmem %s34_s25, 8192  ;;  %p1618_p4 = scmp.lt.s32.totalorder %s34_s25, %s34_s25 }
   0xc   :  { %p1614_p3 = scmp.ne.s32.totalorder %s34_s25, %s1613_s12  ;;  %p1619_p5 = scmp.lt.s32.totalorder %s1613_s12, %s1613_s12 }
   0xe   :  { %p1620_p6 = por %p1619_p5, %p1618_p4 }
  0x10   :  { %p1621_p7 = pnand %p1620_p6, %p1614_p3 }
  0x12   :  { %1624 = shalt.err (!%p1621_p7)
}
  0x13   :  { %s1723_s13 = smov 256   ;;  %s1724_s14 = smov 16  }
  0x14   :  { %39 = dma.hbm_to_vmem [thread:$0]  %s2467_s1, 8192, %s34_s25, [#allocation6], %s1723_s13, %s1723_s13, %s1724_s14  }
  0x15   :  { %s1625_s19 = scalar_lea.hbm %s2466_s0, 6144 }
  0x16   :  { %p1626_p8 = scmp.ne.s32.totalorder %s2466_s0, %s1625_s19  ;;  %p1629_p9 = scmp.lt.u32.totalorder %s1625_s19, %s2466_s0 }
  0x18   :  { %p1631_p10 = pnand %p1629_p9, %p1626_p8 }
  0x1a   :  { %1634 = shalt.err (!%p1631_p10)
}
  0x1b   :  { %s1635_s24 = scalar_lea.vmem %s1770_s27, 6144  ;;  %p1640_p12 = scmp.lt.s32.totalorder %s1770_s27, %s1770_s27 }
  0x1c   :  { %p1636_p11 = scmp.ne.s32.totalorder %s1770_s27, %s1635_s24  ;;  %p1641_p13 = scmp.lt.s32.totalorder %s1635_s24, %s1635_s24 }
  0x1e   :  { %p1642_p0 = por %p1641_p13, %p1640_p12 }
  0x20   :  { %p1643_p1 = pnand %p1642_p0, %p1636_p11 }
  0x22   :  { %1646 = shalt.err (!%p1643_p1)
}
  0x23   :  { %27 = dma.hbm_to_vmem [thread:$0]  %s2466_s0, 6144, %s1770_s27, [#allocation3], %s1723_s13, %s1723_s13, %s1724_s14  }
  0x24   :  { %s1725_s26 = smov [#allocation7]   ;;  %s1647_s8 = scalar_lea.hbm %s2469_s3, 2048 }
  0x25   :  { %s47_s28 = sshll.u32 %s1725_s26, 4  ;;  %p1648_p2 = scmp.ne.s32.totalorder %s2469_s3, %s1647_s8  ;;  %s48_s28 = int_to_ptr.vmem [resolvable:$true] %s47_s28 }
  0x26   :  { %p1651_p3 = scmp.lt.u32.totalorder %s1647_s8, %s2469_s3 }
  0x28   :  { %p1653_p4 = pnand %p1651_p3, %p1648_p2 }
  0x2a   :  { %1656 = shalt.err (!%p1653_p4)
}
  0x2b   :  { %s1657_s15 = scalar_lea.vmem %s48_s28, 2048  ;;  %p1662_p6 = scmp.lt.s32.totalorder %s48_s28, %s48_s28 }
  0x2c   :  { %p1658_p5 = scmp.ne.s32.totalorder %s48_s28, %s1657_s15  ;;  %p1663_p7 = scmp.lt.s32.totalorder %s1657_s15, %s1657_s15 }
  0x2e   :  { %p1664_p8 = por %p1663_p7, %p1662_p6 }
  0x30   :  { %p1665_p9 = pnand %p1664_p8, %p1658_p5 }
  0x32   :  { %1668 = shalt.err (!%p1665_p9)
}
  0x33   :  { %s1726_s0 = smov 128   ;;  %s1727_s27 = smov 8  }
  0x34   :  { %53 = dma.hbm_to_vmem [thread:$0]  %s2469_s3, 2048, %s48_s28, [#allocation6], %s1726_s0, %s1726_s0, %s1727_s27  }
  0x35   :  { %s1728_s16 = smov [#allocation8]   ;;  %s1669_s20 = scalar_lea.hbm %s2471_s5, 2048 }
  0x36   :  { %s61_s17 = sshll.u32 %s1728_s16, 4  ;;  %p1670_p10 = scmp.ne.s32.totalorder %s2471_s5, %s1669_s20  ;;  %s62_s17 = int_to_ptr.vmem [resolvable:$true] %s61_s17 }
  0x37   :  { %p1673_p11 = scmp.lt.u32.totalorder %s1669_s20, %s2471_s5 }
  0x39   :  { %p1675_p12 = pnand %p1673_p11, %p1670_p10 }
  0x3b   :  { %1678 = shalt.err (!%p1675_p12)
}
  0x3c   :  { %s1679_s1 = scalar_lea.vmem %s62_s17, 2048  ;;  %p1684_p0 = scmp.lt.s32.totalorder %s62_s17, %s62_s17 }
  0x3d   :  { %p1680_p13 = scmp.ne.s32.totalorder %s62_s17, %s1679_s1  ;;  %p1685_p1 = scmp.lt.s32.totalorder %s1679_s1, %s1679_s1 }
  0x3f   :  { %p1686_p2 = por %p1685_p1, %p1684_p0 }
  0x41   :  { %p1687_p3 = pnand %p1686_p2, %p1680_p13 }
  0x43   :  { %1690 = shalt.err (!%p1687_p3)
}
  0x44   :  { %67 = dma.hbm_to_vmem [thread:$0]  %s2471_s5, 2048, %s62_s17, [#allocation9], %s1726_s0, %s1726_s0, %s1727_s27  }
  0x45   :  { %1713 = dma.done.wait [#allocation3], 6144  }
  0x46   :  { %1714 = vsyncadd [#allocation3], 4294961152 }
  0x47   :  { %1715 = dma.done.wait [#allocation6], 10240  }
  0x48   :  { %1716 = vsyncadd [#allocation6], 4294957056 }
  0x49   :  { %1717 = dma.done.wait [#allocation9], 2048  }
  0x4a   :  { %1718 = vsyncadd [#allocation9], 4294965248  ;;  %v131_v0 = vld [vmem:[#allocation5 + $0x8] sm:$0xff]  ;;  %v133_v1 = vld [vmem:[#allocation5 + $0x18] sm:$0xff] }
  0x4b   :  { %v130_v2 = vld [vmem:[#allocation5] sm:$0xff]  ;;  %v1462_v3 = vpack.c.bf16 %v133_v1, %v131_v0  ;;  %v132_v4 = vld [vmem:[#allocation5 + $0x10] sm:$0xff]  ;;  %v135_v5 = vld [vmem:[#allocation5 + $0x28] sm:$0xff] }
  0x4c   :  { %v137_v6 = vld [vmem:[#allocation5 + $0x38] sm:$0xff]  ;;  %v1464_v7 = vpack.c.bf16 %v132_v4, %v130_v2  ;;  %v134_v9 = vld [vmem:[#allocation5 + $0x20] sm:$0xff]  ;;  %v136_v10 = vld [vmem:[#allocation5 + $0x30] sm:$0xff] }
  0x4d   :  { %v1466_v8 = vpack.c.bf16 %v137_v6, %v135_v5  ;;  %v139_v11 = vld [vmem:[#allocation5 + $0x48] sm:$0xff]  ;;  %1463 = vmatprep.subr.bf16.mxu0 %v1462_v3  ;;  %v141_v12 = vld [vmem:[#allocation5 + $0x58] sm:$0xff]  ;;  %v1468_v13 = vpack.c.bf16 %v136_v10, %v134_v9  ;;  %v138_v15 = vld [vmem:[#allocation5 + $0x40] sm:$0xff] }
  0x4e   :  { %1465 = vmatpush1.bf16.msra.mxu0 %v1464_v7  ;;  %v1470_v14 = vpack.c.bf16 %v141_v12, %v139_v11  ;;  %v140_v16 = vld [vmem:[#allocation5 + $0x50] sm:$0xff]  ;;  %v143_v17 = vld [vmem:[#allocation5 + $0x68] sm:$0xff]  ;;  %v145_v18 = vld [vmem:[#allocation5 + $0x78] sm:$0xff] }
  0x4f   :  { %1467 = vmatprep.subr.bf16.mxu0 %v1466_v8  ;;  %v1472_v19 = vpack.c.bf16 %v140_v16, %v138_v15  ;;  %v1474_v20 = vpack.c.bf16 %v145_v18, %v143_v17  ;;  %v142_v21 = vld [vmem:[#allocation5 + $0x60] sm:$0xff]  ;;  %v144_v22 = vld [vmem:[#allocation5 + $0x70] sm:$0xff]  ;;  %v147_v23 = vld [vmem:[#allocation5 + $0x88] sm:$0xff] }
  0x50   :  { %v149_v24 = vld [vmem:[#allocation5 + $0x98] sm:$0xff]  ;;  %v1476_v25 = vpack.c.bf16 %v144_v22, %v142_v21  ;;  %v146_v27 = vld [vmem:[#allocation5 + $0x80] sm:$0xff]  ;;  %v148_v28 = vld [vmem:[#allocation5 + $0x90] sm:$0xff] }
  0x51   :  { %v1478_v26 = vpack.c.bf16 %v149_v24, %v147_v23  ;;  %v151_v29 = vld [vmem:[#allocation5 + $0xa8] sm:$0xff]  ;;  %v153_v30 = vld [vmem:[#allocation5 + $0xb8] sm:$0xff]  ;;  %v1480_v31 = vpack.c.bf16 %v148_v28, %v146_v27  ;;  %v150_v33 = vld [vmem:[#allocation5 + $0xa0] sm:$0xff] }
  0x52   :  { %1469 = vmatpush1.bf16.msra.mxu0 %v1468_v13  ;;  %v1482_v32 = vpack.c.bf16 %v153_v30, %v151_v29  ;;  %v152_v34 = vld [vmem:[#allocation5 + $0xb0] sm:$0xff]  ;;  %v155_v35 = vld [vmem:[#allocation5 + $0xc8] sm:$0xff]  ;;  %v157_v36 = vld [vmem:[#allocation5 + $0xd8] sm:$0xff] }
  0x53   :  { %1471 = vmatprep.subr.bf16.mxu0 %v1470_v14  ;;  %v1484_v37 = vpack.c.bf16 %v152_v34, %v150_v33  ;;  %v1486_v38 = vpack.c.bf16 %v157_v36, %v155_v35  ;;  %v154_v39 = vld [vmem:[#allocation5 + $0xc0] sm:$0xff]  ;;  %v156_v40 = vld [vmem:[#allocation5 + $0xd0] sm:$0xff]  ;;  %v83_v41 = vld [vmem:[#allocation2 + $0x8] sm:$0xff] }
  0x54   :  { %v159_v42 = vld [vmem:[#allocation5 + $0xe8] sm:$0xff]  ;;  %v161_v43 = vld [vmem:[#allocation5 + $0xf8] sm:$0xff]  ;;  %270 = vmatprep.mubr.f32.mxu0 %v83_v41  ;;  %v1488_v44 = vpack.c.bf16 %v156_v40, %v154_v39  ;;  %v158_v46 = vld [vmem:[#allocation5 + $0xe0] sm:$0xff] }
  0x55   :  { %v1490_v45 = vpack.c.bf16 %v161_v43, %v159_v42  ;;  %v160_v47 = vld [vmem:[#allocation5 + $0xf0] sm:$0xff]  ;;  %v163_v48 = vld [vmem:[#allocation5 + $0x108] sm:$0xff]  ;;  %v165_v49 = vld [vmem:[#allocation5 + $0x118] sm:$0xff] }
  0x56   :  { %1473 = vmatpush1.bf16.msra.mxu0 %v1472_v19  ;;  %v1492_v50 = vpack.c.bf16 %v160_v47, %v158_v46  ;;  %v1494_v51 = vpack.c.bf16 %v165_v49, %v163_v48  ;;  %v162_v52 = vld [vmem:[#allocation5 + $0x100] sm:$0xff]  ;;  %v164_v53 = vld [vmem:[#allocation5 + $0x110] sm:$0xff]  ;;  %v167_v54 = vld [vmem:[#allocation5 + $0x128] sm:$0xff] }
  0x57   :  { %1475 = vmatprep.subr.bf16.mxu0 %v1474_v20  ;;  %v169_v55 = vld [vmem:[#allocation5 + $0x138] sm:$0xff]  ;;  %v1496_v56 = vpack.c.bf16 %v164_v53, %v162_v52  ;;  %v166_v58 = vld [vmem:[#allocation5 + $0x120] sm:$0xff]  ;;  %v168_v59 = vld [vmem:[#allocation5 + $0x130] sm:$0xff] }
  0x58   :  { %v1498_v57 = vpack.c.bf16 %v169_v55, %v167_v54  ;;  %v171_v60 = vld [vmem:[#allocation5 + $0x148] sm:$0xff]  ;;  %v173_v61 = vld [vmem:[#allocation5 + $0x158] sm:$0xff]  ;;  %v1500_v62 = vpack.c.bf16 %v168_v59, %v166_v58  ;;  %v170_v0 = vld [vmem:[#allocation5 + $0x140] sm:$0xff] }
  0x59   :  { %v1502_v63 = vpack.c.bf16 %v173_v61, %v171_v60  ;;  %v172_v1 = vld [vmem:[#allocation5 + $0x150] sm:$0xff]  ;;  %v175_v2 = vld [vmem:[#allocation5 + $0x168] sm:$0xff]  ;;  %v177_v3 = vld [vmem:[#allocation5 + $0x178] sm:$0xff] }
  0x5a   :  { %1477 = vmatpush1.bf16.msra.mxu0 %v1476_v25  ;;  %v1504_v4 = vpack.c.bf16 %v172_v1, %v170_v0  ;;  %v1506_v5 = vpack.c.bf16 %v177_v3, %v175_v2  ;;  %v174_v6 = vld [vmem:[#allocation5 + $0x160] sm:$0xff]  ;;  %v176_v7 = vld [vmem:[#allocation5 + $0x170] sm:$0xff]  ;;  %v179_v8 = vld [vmem:[#allocation5 + $0x188] sm:$0xff] }
  0x5b   :  { %1479 = vmatprep.subr.bf16.mxu0 %v1478_v26  ;;  %v181_v9 = vld [vmem:[#allocation5 + $0x198] sm:$0xff]  ;;  %v1508_v10 = vpack.c.bf16 %v176_v7, %v174_v6  ;;  %v178_v12 = vld [vmem:[#allocation5 + $0x180] sm:$0xff]  ;;  %v180_v13 = vld [vmem:[#allocation5 + $0x190] sm:$0xff] }
  0x5c   :  { %v1510_v11 = vpack.c.bf16 %v181_v9, %v179_v8  ;;  %v183_v14 = vld [vmem:[#allocation5 + $0x1a8] sm:$0xff]  ;;  %v185_v15 = vld [vmem:[#allocation5 + $0x1b8] sm:$0xff]  ;;  %v1512_v16 = vpack.c.bf16 %v180_v13, %v178_v12  ;;  %v182_v18 = vld [vmem:[#allocation5 + $0x1a0] sm:$0xff] }
  0x5d   :  { %v1514_v17 = vpack.c.bf16 %v185_v15, %v183_v14  ;;  %v184_v19 = vld [vmem:[#allocation5 + $0x1b0] sm:$0xff]  ;;  %v187_v20 = vld [vmem:[#allocation5 + $0x1c8] sm:$0xff]  ;;  %v189_v21 = vld [vmem:[#allocation5 + $0x1d8] sm:$0xff] }
  0x5e   :  { %1481 = vmatpush1.bf16.msra.mxu0 %v1480_v31  ;;  %v1516_v22 = vpack.c.bf16 %v184_v19, %v182_v18  ;;  %v1518_v23 = vpack.c.bf16 %v189_v21, %v187_v20  ;;  %v186_v24 = vld [vmem:[#allocation5 + $0x1c0] sm:$0xff]  ;;  %v188_v25 = vld [vmem:[#allocation5 + $0x1d0] sm:$0xff]  ;;  %v191_v26 = vld [vmem:[#allocation5 + $0x1e8] sm:$0xff] }
  0x5f   :  { %1483 = vmatprep.subr.bf16.mxu0 %v1482_v32  ;;  %v193_v27 = vld [vmem:[#allocation5 + $0x1f8] sm:$0xff]  ;;  %v1520_v28 = vpack.c.bf16 %v188_v25, %v186_v24  ;;  %v190_v30 = vld [vmem:[#allocation5 + $0x1e0] sm:$0xff]  ;;  %v192_v31 = vld [vmem:[#allocation5 + $0x1f0] sm:$0xff] }
  0x60   :  { %v1522_v29 = vpack.c.bf16 %v193_v27, %v191_v26  ;;  %v1524_v32 = vpack.c.bf16 %v192_v31, %v190_v30  ;;  %v82_v33 = vld [vmem:[#allocation2] sm:$0xff]  ;;  %v85_v34 = vld [vmem:[#allocation2 + $0x18] sm:$0xff]  ;;  %v84_v35 = vld [vmem:[#allocation2 + $0x10] sm:$0xff] }
  0x61   :  { %v87_v36 = vld [vmem:[#allocation2 + $0x28] sm:$0xff]  ;;  %v88_v39 = vld [vmem:[#allocation2 + $0x30] sm:$0xff]  ;;  %v90_v41 = vld [vmem:[#allocation2 + $0x40] sm:$0xff] }
  0x62   :  { %1485 = vmatpush1.bf16.msra.mxu0 %v1484_v37  ;;  %v86_v37 = vld [vmem:[#allocation2 + $0x20] sm:$0xff]  ;;  %v91_v40 = vld [vmem:[#allocation2 + $0x48] sm:$0xff]  ;;  %v93_v42 = vld [vmem:[#allocation2 + $0x58] sm:$0xff] }
  0x63   :  { %1487 = vmatprep.subr.bf16.mxu0 %v1486_v38  ;;  %v89_v38 = vld [vmem:[#allocation2 + $0x38] sm:$0xff]  ;;  %v92_v43 = vld [vmem:[#allocation2 + $0x50] sm:$0xff]  ;;  %v99_v48 = vld [vmem:[#allocation2 + $0x88] sm:$0xff] }
  0x64   :  { %v97_v46 = vld [vmem:[#allocation2 + $0x78] sm:$0xff]  ;;  %v96_v47 = vld [vmem:[#allocation2 + $0x70] sm:$0xff]  ;;  %v98_v49 = vld [vmem:[#allocation2 + $0x80] sm:$0xff] }
  0x65   :  { %v103_v52 = vld [vmem:[#allocation2 + $0xa8] sm:$0xff]  ;;  %v102_v53 = vld [vmem:[#allocation2 + $0xa0] sm:$0xff]  ;;  %v105_v54 = vld [vmem:[#allocation2 + $0xb8] sm:$0xff] }
  0x66   :  { %1489 = vmatpush1.bf16.msra.mxu0 %v1488_v44  ;;  %v95_v44 = vld [vmem:[#allocation2 + $0x68] sm:$0xff]  ;;  %v104_v55 = vld [vmem:[#allocation2 + $0xb0] sm:$0xff]  ;;  %v109_v58 = vld [vmem:[#allocation2 + $0xd8] sm:$0xff] }
  0x67   :  { %1491 = vmatprep.subr.bf16.mxu0 %v1490_v45  ;;  %v94_v45 = vld [vmem:[#allocation2 + $0x60] sm:$0xff]  ;;  %v108_v59 = vld [vmem:[#allocation2 + $0xd0] sm:$0xff]  ;;  %v111_v60 = vld [vmem:[#allocation2 + $0xe8] sm:$0xff] }
  0x68   :  { %v110_v61 = vld [vmem:[#allocation2 + $0xe0] sm:$0xff]  ;;  %v115_v0 = vld [vmem:[#allocation2 + $0x108] sm:$0xff]  ;;  %v117_v2 = vld [vmem:[#allocation2 + $0x118] sm:$0xff] }
  0x69   :  { %v114_v1 = vld [vmem:[#allocation2 + $0x100] sm:$0xff]  ;;  %v116_v3 = vld [vmem:[#allocation2 + $0x110] sm:$0xff]  ;;  %v121_v6 = vld [vmem:[#allocation2 + $0x138] sm:$0xff] }
  0x6a   :  { %1493 = vmatpush1.bf16.msra.mxu0 %v1492_v50  ;;  %v101_v50 = vld [vmem:[#allocation2 + $0x98] sm:$0xff]  ;;  %v120_v7 = vld [vmem:[#allocation2 + $0x130] sm:$0xff]  ;;  %v123_v8 = vld [vmem:[#allocation2 + $0x148] sm:$0xff] }
  0x6b   :  { %1495 = vmatprep.subr.bf16.mxu0 %v1494_v51  ;;  %v100_v51 = vld [vmem:[#allocation2 + $0x90] sm:$0xff]  ;;  %v122_v9 = vld [vmem:[#allocation2 + $0x140] sm:$0xff]  ;;  %v127_v12 = vld [vmem:[#allocation2 + $0x168] sm:$0xff] }
  0x6c   :  { %v126_v13 = vld [vmem:[#allocation2 + $0x160] sm:$0xff]  ;;  %v129_v14 = vld [vmem:[#allocation2 + $0x178] sm:$0xff]  ;;  %v128_v15 = vld [vmem:[#allocation2 + $0x170] sm:$0xff] }
  0x6d   :  { %v626_v19 = vld [vmem:[#allocation7 + $0x10] sm:$0xff]  ;;  %v627_v20 = vld [vmem:[#allocation7 + $0x18] sm:$0xff] }
  0x6e   :  { %1497 = vmatpush1.bf16.msra.mxu0 %v1496_v56  ;;  %v107_v56 = vld [vmem:[#allocation2 + $0xc8] sm:$0xff]  ;;  %v1530_v21 = vpack.c.bf16 %v627_v20, %v626_v19  ;;  %v630_v25 = vld [vmem:[#allocation7 + $0x30] sm:$0xff]  ;;  %v631_v26 = vld [vmem:[#allocation7 + $0x38] sm:$0xff] }
  0x6f   :  { %1499 = vmatprep.subr.bf16.mxu0 %v1498_v57  ;;  %v106_v57 = vld [vmem:[#allocation2 + $0xc0] sm:$0xff]  ;;  %v1538_v27 = vpack.c.bf16 %v631_v26, %v630_v25  ;;  %v634_v31 = vld [vmem:[#allocation7 + $0x50] sm:$0xff] }
  0x72   :  { %1501 = vmatpush1.bf16.msra.mxu0 %v1500_v62  ;;  %v113_v62 = vld [vmem:[#allocation2 + $0xf8] sm:$0xff] }
  0x73   :  { %1503 = vmatprep.subr.bf16.mxu0 %v1502_v63  ;;  %v112_v63 = vld [vmem:[#allocation2 + $0xf0] sm:$0xff] }
  0x76   :  { %1505 = vmatpush1.bf16.msra.mxu0 %v1504_v4  ;;  %v119_v4 = vld [vmem:[#allocation2 + $0x128] sm:$0xff] }
  0x77   :  { %1507 = vmatprep.subr.bf16.mxu0 %v1506_v5  ;;  %v118_v5 = vld [vmem:[#allocation2 + $0x120] sm:$0xff] }
  0x7a   :  { %1509 = vmatpush1.bf16.msra.mxu0 %v1508_v10  ;;  %v125_v10 = vld [vmem:[#allocation2 + $0x158] sm:$0xff] }
  0x7b   :  { %1511 = vmatprep.subr.bf16.mxu0 %v1510_v11  ;;  %v124_v11 = vld [vmem:[#allocation2 + $0x150] sm:$0xff] }
  0x7e   :  { %1513 = vmatpush1.bf16.msra.mxu0 %v1512_v16  ;;  %v624_v16 = vld [vmem:[#allocation7] sm:$0xff] }
  0x7f   :  { %1515 = vmatprep.subr.bf16.mxu0 %v1514_v17  ;;  %v625_v17 = vld [vmem:[#allocation7 + $0x8] sm:$0xff] }
  0x80   :  { %v1526_v18 = vpack.c.bf16 %v625_v17, %v624_v16 }
  0x82   :  { %1517 = vmatpush1.bf16.msra.mxu0 %v1516_v22  ;;  %1527 = vmatprep.subr.bf16.mxu1 %v1526_v18  ;;  %v628_v22 = vld [vmem:[#allocation7 + $0x20] sm:$0xff] }
  0x83   :  { %1519 = vmatprep.subr.bf16.mxu0 %v1518_v23  ;;  %1529 = vmatpush3.bf16.msra.mxu1 %v1526_v18  ;;  %v629_v23 = vld [vmem:[#allocation7 + $0x28] sm:$0xff] }
  0x84   :  { %1531 = vmatprep.subr.bf16.mxu1 %v1530_v21  ;;  %v1534_v24 = vpack.c.bf16 %v629_v23, %v628_v22 }
  0x86   :  { %1521 = vmatpush1.bf16.msra.mxu0 %v1520_v28  ;;  %v632_v28 = vld [vmem:[#allocation7 + $0x40] sm:$0xff] }
  0x87   :  { %1523 = vmatprep.subr.bf16.mxu0 %v1522_v29  ;;  %1533 = vmatpush3.bf16.msra.mxu1 %v1530_v21  ;;  %v633_v29 = vld [vmem:[#allocation7 + $0x48] sm:$0xff] }
  0x88   :  { %1535 = vmatprep.subr.bf16.mxu1 %v1534_v24  ;;  %v1542_v30 = vpack.c.bf16 %v633_v29, %v632_v28 }
  0x8a   :  { %1525 = vmatpush1.bf16.msra.mxu0 %v1524_v32  ;;  %v635_v32 = vld [vmem:[#allocation7 + $0x58] sm:$0xff] }
  0x8b   :  { %1537 = vmatpush3.bf16.msra.mxu1 %v1534_v24 }
  0x8c   :  { %1539 = vmatprep.subr.bf16.mxu1 %v1538_v27 }
  0x8d   :  { %271 = vmatmul.mubr.f32.vlgmr.msra.gmra.mrb[0].mxu0 %v82_v33  ;;  %v1546_v33 = vpack.c.bf16 %v635_v32, %v634_v31 }
  0x8e   :  { %276 = vmatprep.mubr.f32.mxu0 %v85_v34  ;;  %v636_v34 = vld [vmem:[#allocation7 + $0x60] sm:$0xff] }
  0x8f   :  { %1541 = vmatpush3.bf16.msra.mxu1 %v1538_v27 }
  0x90   :  { %1543 = vmatprep.subr.bf16.mxu1 %v1542_v30 }
  0x91   :  { %277 = vmatmul.mubr.f32.gmra.mrb[2].mxu0 %v84_v35  ;;  %v637_v35 = vld [vmem:[#allocation7 + $0x68] sm:$0xff] }
  0x92   :  { %282 = vmatprep.mubr.f32.mxu0 %v87_v36  ;;  %v1550_v36 = vpack.c.bf16 %v637_v35, %v636_v34 }
  0x93   :  { %1545 = vmatpush3.bf16.msra.mxu1 %v1542_v30 }
  0x94   :  { %1547 = vmatprep.subr.bf16.mxu1 %v1546_v33 }
  0x95   :  { %283 = vmatmul.mubr.f32.gmra.mrb[4].mxu0 %v86_v37 }
  0x96   :  { %288 = vmatprep.mubr.f32.mxu0 %v89_v38 }
  0x97   :  { %1549 = vmatpush3.bf16.msra.mxu1 %v1546_v33 }
  0x98   :  { %1551 = vmatprep.subr.bf16.mxu1 %v1550_v36 }
  0x99   :  { %289 = vmatmul.mubr.f32.gmra.mrb[6].mxu0 %v88_v39  ;;  %v638_v39 = vld [vmem:[#allocation7 + $0x70] sm:$0xff] }
  0x9a   :  { %294 = vmatprep.mubr.f32.mxu0 %v91_v40  ;;  %v639_v40 = vld [vmem:[#allocation7 + $0x78] sm:$0xff] }
  0x9b   :  { %1553 = vmatpush3.bf16.msra.mxu1 %v1550_v36 }
  0x9d   :  { %295 = vmatmul.mubr.f32.gmra.mrb[8].mxu0 %v90_v41  ;;  %v1554_v41 = vpack.c.bf16 %v639_v40, %v638_v39 }
  0x9e   :  { %300 = vmatprep.mubr.f32.mxu0 %v93_v42 }
  0x9f   :  { %1555 = vmatprep.subr.bf16.mxu1 %v1554_v41 }
  0xa0   :  { %1557 = vmatpush3.bf16.msra.mxu1 %v1554_v41 }
  0xa1   :  { %301 = vmatmul.mubr.f32.gmra.mrb[10].mxu0 %v92_v43 }
  0xa2   :  { %306 = vmatprep.mubr.f32.mxu0 %v95_v44  ;;  %v196_v44 = vlaneseq }
  0xa5   :  { %307 = vmatmul.mubr.f32.gmra.mrb[12].mxu0 %v94_v45 }
  0xa6   :  { %312 = vmatprep.mubr.f32.mxu0 %v97_v46 }
  0xa9   :  { %313 = vmatmul.mubr.f32.gmra.mrb[14].mxu0 %v96_v47  ;;  %v1837_v47 = vshrl.u32 %v196_v44, 7 }
  0xaa   :  { %318 = vmatprep.mubr.f32.mxu0 %v99_v48 }
  0xad   :  { %319 = vmatmul.mubr.f32.gmra.mrb[16].mxu0 %v98_v49 }
  0xae   :  { %324 = vmatprep.mubr.f32.mxu0 %v101_v50  ;;  %v198_v50 = vsub.s32 0, %v1837_v47 }
  0xb1   :  { %325 = vmatmul.mubr.f32.gmra.mrb[18].mxu0 %v100_v51 }
  0xb2   :  { %330 = vmatprep.mubr.f32.mxu0 %v103_v52  ;;  %v1845_v52 = vld [vmem:[%s2468_s2] sm:$0x3] }
  0xb5   :  { %331 = vmatmul.mubr.f32.gmra.mrb[20].mxu0 %v102_v53 }
  0xb6   :  { %336 = vmatprep.mubr.f32.mxu0 %v105_v54  ;;  %v1850_v54 = vrot.slane %v1845_v52, %v198_v50 }
  0xb9   :  { %337 = vmatmul.mubr.f32.gmra.mrb[22].mxu0 %v104_v55 }
  0xba   :  { %342 = vmatprep.mubr.f32.mxu0 %v107_v56 }
  0xbd   :  { %343 = vmatmul.mubr.f32.gmra.mrb[24].mxu0 %v106_v57 }
  0xbe   :  { %348 = vmatprep.mubr.f32.mxu0 %v109_v58 }
  0xc1   :  { %349 = vmatmul.mubr.f32.gmra.mrb[26].mxu0 %v108_v59 }
  0xc2   :  { %354 = vmatprep.mubr.f32.mxu0 %v111_v60 }
  0xc5   :  { %355 = vmatmul.mubr.f32.gmra.mrb[28].mxu0 %v110_v61 }
  0xc6   :  { %360 = vmatprep.mubr.f32.mxu0 %v113_v62 }
  0xc9   :  { %361 = vmatmul.mubr.f32.gmra.mrb[30].mxu0 %v112_v63 }
  0xca   :  { %366 = vmatprep.mubr.f32.mxu0 %v115_v0 }
  0xcd   :  { %367 = vmatmul.mubr.f32.gmra.mrb[32].mxu0 %v114_v1 }
  0xce   :  { %372 = vmatprep.mubr.f32.mxu0 %v117_v2 }
  0xd1   :  { %373 = vmatmul.mubr.f32.gmra.mrb[34].mxu0 %v116_v3 }
  0xd2   :  { %378 = vmatprep.mubr.f32.mxu0 %v119_v4 }
  0xd5   :  { %379 = vmatmul.mubr.f32.gmra.mrb[36].mxu0 %v118_v5 }
  0xd6   :  { %384 = vmatprep.mubr.f32.mxu0 %v121_v6 }
  0xd9   :  { %385 = vmatmul.mubr.f32.gmra.mrb[38].mxu0 %v120_v7 }
  0xda   :  { %390 = vmatprep.mubr.f32.mxu0 %v123_v8 }
  0xdd   :  { %391 = vmatmul.mubr.f32.gmra.mrb[40].mxu0 %v122_v9 }
  0xde   :  { %396 = vmatprep.mubr.f32.mxu0 %v125_v10 }
  0xe1   :  { %397 = vmatmul.mubr.f32.gmra.mrb[42].mxu0 %v124_v11 }
  0xe2   :  { %402 = vmatprep.mubr.f32.mxu0 %v127_v12 }
  0xe5   :  { %403 = vmatmul.mubr.f32.gmra.mrb[44].mxu0 %v126_v13 }
  0xe6   :  { %408 = vmatprep.mubr.f32.mxu0 %v129_v14 }
  0xe9   :  { %409 = vmatmul.mubr.f32.gmra.mrb[46].mxu0 %v128_v15 }
 0x160   :  { %v272_v37 = vpop.f32.mrb[0].mxu0 }
 0x161   :  { %v1831_v38 = vpop.f32.mrb[1].mxu0  ;;  %v273_v58 = vadd.f32 %v272_v37, %v1850_v54 }
 0x163   :  { %v1862_v0 = vmax.f32 %v273_v58, 0.0 }
 0x164   :  { %v278_v42 = vpop.f32.mrb[2].mxu0 }
 0x165   :  { %v1833_v43 = vpop.f32.mrb[3].mxu0  ;;  %v279_v57 = vadd.f32 %v278_v42, %v1850_v54  ;;  %v493_v8 = vmul.f32 %v1862_v0, %v1862_v0 }
 0x167   :  { %v1859_v62 = vmax.f32 %v279_v57, 0.0 }
 0x168   :  { %v284_v45 = vpop.f32.mrb[4].mxu0 }
 0x169   :  { %v1835_v46 = vpop.f32.mrb[5].mxu0  ;;  %v285_v59 = vadd.f32 %v284_v45, %v1850_v54  ;;  %v494_v5 = vmul.f32 %v1859_v62, %v1859_v62  ;;  %v463_v13 = vadd.f32 %v1859_v62, %v1862_v0 }
 0x16b   :  { %v1864_v1 = vmax.f32 %v285_v59, 0.0  ;;  %v517_v15 = vadd.f32 %v494_v5, %v493_v8 }
 0x16c   :  { %v290_v48 = vpop.f32.mrb[6].mxu0 }
 0x16d   :  { %v1839_v49 = vpop.f32.mrb[7].mxu0  ;;  %v291_v63 = vadd.f32 %v290_v48, %v1850_v54  ;;  %v495_v9 = vmul.f32 %v1864_v1, %v1864_v1  ;;  %v464_v18 = vadd.f32 %v463_v13, %v1864_v1 }
 0x16f   :  { %v1871_v6 = vmax.f32 %v291_v63, 0.0  ;;  %v518_v20 = vadd.f32 %v517_v15, %v495_v9 }
 0x170   :  { %v296_v51 = vpop.f32.mrb[8].mxu0 }
 0x171   :  { %v1847_v53 = vpop.f32.mrb[9].mxu0  ;;  %v297_v2 = vadd.f32 %v296_v51, %v1850_v54  ;;  %v496_v16 = vmul.f32 %v1871_v6, %v1871_v6  ;;  %v465_v24 = vadd.f32 %v464_v18, %v1871_v6 }
 0x173   :  { %v1878_v10 = vmax.f32 %v297_v2, 0.0  ;;  %v519_v27 = vadd.f32 %v518_v20, %v496_v16 }
 0x174   :  { %v302_v55 = vpop.f32.mrb[10].mxu0 }
 0x175   :  { %v1852_v56 = vpop.f32.mrb[11].mxu0  ;;  %v303_v7 = vadd.f32 %v302_v55, %v1850_v54  ;;  %v497_v21 = vmul.f32 %v1878_v10, %v1878_v10  ;;  %v466_v29 = vadd.f32 %v465_v24, %v1878_v10 }
 0x177   :  { %v1887_v17 = vmax.f32 %v303_v7, 0.0  ;;  %v520_v32 = vadd.f32 %v519_v27, %v497_v21 }
 0x178   :  { %v308_v60 = vpop.f32.mrb[12].mxu0 }
 0x179   :  { %v1857_v61 = vpop.f32.mrb[13].mxu0  ;;  %v309_v11 = vadd.f32 %v308_v60, %v1850_v54  ;;  %v498_v28 = vmul.f32 %v1887_v17, %v1887_v17  ;;  %v467_v35 = vadd.f32 %v466_v29, %v1887_v17 }
 0x17b   :  { %v1893_v22 = vmax.f32 %v309_v11, 0.0  ;;  %v521_v40 = vadd.f32 %v520_v32, %v498_v28 }
 0x17c   :  { %v314_v3 = vpop.f32.mrb[14].mxu0 }
 0x17d   :  { %v1867_v4 = vpop.f32.mrb[15].mxu0  ;;  %v315_v19 = vadd.f32 %v314_v3, %v1850_v54  ;;  %v499_v33 = vmul.f32 %v1893_v22, %v1893_v22  ;;  %v468_v41 = vadd.f32 %v467_v35, %v1893_v22 }
 0x17f   :  { %v1902_v30 = vmax.f32 %v315_v19, 0.0  ;;  %v522_v45 = vadd.f32 %v521_v40, %v499_v33 }
 0x180   :  { %v320_v12 = vpop.f32.mrb[16].mxu0 }
 0x181   :  { %v1883_v14 = vpop.f32.mrb[17].mxu0  ;;  %v321_v25 = vadd.f32 %v320_v12, %v1850_v54  ;;  %2481 = vst [vmem:[#allocation15_spill] sm:$0xff] %v1902_v30  ;;  %v500_v42 = vmul.f32 %v1902_v30, %v1902_v30  ;;  %v469_v50 = vadd.f32 %v468_v41, %v1902_v30 }
 0x183   :  { %v1908_v36 = vmax.f32 %v321_v25, 0.0  ;;  %v523_v59 = vadd.f32 %v522_v45, %v500_v42 }
 0x184   :  { %v326_v23 = vpop.f32.mrb[18].mxu0 }
 0x185   :  { %v1897_v26 = vpop.f32.mrb[19].mxu0  ;;  %v327_v31 = vadd.f32 %v326_v23, %v1850_v54  ;;  %2482 = vst [vmem:[#allocation16_spill] sm:$0xff] %v1908_v36  ;;  %v501_v51 = vmul.f32 %v1908_v36, %v1908_v36  ;;  %v470_v60 = vadd.f32 %v469_v50, %v1908_v36 }
 0x187   :  { %v1916_v44 = vmax.f32 %v327_v31, 0.0  ;;  %v524_v5 = vadd.f32 %v523_v59, %v501_v51 }
 0x188   :  { %v332_v34 = vpop.f32.mrb[20].mxu0 }
 0x189   :  { %v333_v37 = vadd.f32 %v332_v34, %v1850_v54  ;;  %v1911_v39 = vpop.f32.mrb[21].mxu0  ;;  %2483 = vst [vmem:[#allocation17_spill] sm:$0xff] %v1916_v44  ;;  %v502_v63 = vmul.f32 %v1916_v44, %v1916_v44  ;;  %v471_v7 = vadd.f32 %v470_v60, %v1916_v44 }
 0x18b   :  { %v1921_v55 = vmax.f32 %v333_v37, 0.0  ;;  %v525_v12 = vadd.f32 %v524_v5, %v502_v63 }
 0x18c   :  { %v338_v48 = vpop.f32.mrb[22].mxu0 }
 0x18d   :  { %2484 = vst [vmem:[#allocation18_spill] sm:$0xff] %v1921_v55  ;;  %v339_v57 = vadd.f32 %v338_v48, %v1850_v54  ;;  %v1924_v58 = vpop.f32.mrb[23].mxu0  ;;  %v503_v8 = vmul.f32 %v1921_v55, %v1921_v55  ;;  %v472_v13 = vadd.f32 %v471_v7, %v1921_v55 }
 0x18f   :  { %v1929_v2 = vmax.f32 %v339_v57, 0.0  ;;  %v526_v19 = vadd.f32 %v525_v12, %v503_v8 }
 0x190   :  { %v344_v3 = vpop.f32.mrb[24].mxu0 }
 0x191   :  { %2485 = vst [vmem:[#allocation19_spill] sm:$0xff] %v1929_v2  ;;  %v345_v9 = vadd.f32 %v344_v3, %v1850_v54  ;;  %v1935_v11 = vpop.f32.mrb[25].mxu0  ;;  %v504_v15 = vmul.f32 %v1929_v2, %v1929_v2  ;;  %v473_v20 = vadd.f32 %v472_v13, %v1929_v2 }
 0x193   :  { %v1940_v16 = vmax.f32 %v345_v9, 0.0  ;;  %v527_v25 = vadd.f32 %v526_v19, %v504_v15 }
 0x194   :  { %v350_v18 = vpop.f32.mrb[26].mxu0 }
 0x195   :  { %v505_v21 = vmul.f32 %v1940_v16, %v1940_v16  ;;  %v351_v23 = vadd.f32 %v350_v18, %v1850_v54  ;;  %v1946_v24 = vpop.f32.mrb[27].mxu0  ;;  %v474_v27 = vadd.f32 %v473_v20, %v1940_v16 }
 0x197   :  { %v1949_v28 = vmax.f32 %v351_v23, 0.0  ;;  %v528_v31 = vadd.f32 %v527_v25, %v505_v21 }
 0x198   :  { %v356_v29 = vpop.f32.mrb[28].mxu0 }
 0x199   :  { %v475_v32 = vadd.f32 %v474_v27, %v1949_v28  ;;  %v506_v33 = vmul.f32 %v1949_v28, %v1949_v28  ;;  %v357_v34 = vadd.f32 %v356_v29, %v1850_v54  ;;  %v1955_v35 = vpop.f32.mrb[29].mxu0 }
 0x19b   :  { %v529_v37 = vadd.f32 %v528_v31, %v506_v33  ;;  %v1957_v40 = vmax.f32 %v357_v34, 0.0 }
 0x19c   :  { %v362_v41 = vpop.f32.mrb[30].mxu0 }
 0x19d   :  { %v476_v42 = vadd.f32 %v475_v32, %v1957_v40  ;;  %v507_v45 = vmul.f32 %v1957_v40, %v1957_v40  ;;  %v363_v48 = vadd.f32 %v362_v41, %v1850_v54  ;;  %v1963_v50 = vpop.f32.mrb[31].mxu0 }
 0x19f   :  { %v530_v51 = vadd.f32 %v529_v37, %v507_v45  ;;  %v1965_v57 = vmax.f32 %v363_v48, 0.0 }
 0x1a0   :  { %v368_v59 = vpop.f32.mrb[32].mxu0 }
 0x1a1   :  { %v477_v60 = vadd.f32 %v476_v42, %v1965_v57  ;;  %v508_v63 = vmul.f32 %v1965_v57, %v1965_v57  ;;  %v369_v3 = vadd.f32 %v368_v59, %v1850_v54  ;;  %v1971_v5 = vpop.f32.mrb[33].mxu0 }
 0x1a3   :  { %v531_v7 = vadd.f32 %v530_v51, %v508_v63  ;;  %v1973_v8 = vmax.f32 %v369_v3, 0.0 }
 0x1a4   :  { %v374_v9 = vpop.f32.mrb[34].mxu0 }
 0x1a5   :  { %v478_v12 = vadd.f32 %v477_v60, %v1973_v8  ;;  %v509_v13 = vmul.f32 %v1973_v8, %v1973_v8  ;;  %v375_v15 = vadd.f32 %v374_v9, %v1850_v54  ;;  %v1979_v18 = vpop.f32.mrb[35].mxu0 }
 0x1a7   :  { %v532_v19 = vadd.f32 %v531_v7, %v509_v13  ;;  %v1981_v20 = vmax.f32 %v375_v15, 0.0 }
 0x1a8   :  { %v380_v21 = vpop.f32.mrb[36].mxu0 }
 0x1a9   :  { %v479_v23 = vadd.f32 %v478_v12, %v1981_v20  ;;  %v510_v25 = vmul.f32 %v1981_v20, %v1981_v20  ;;  %v381_v27 = vadd.f32 %v380_v21, %v1850_v54  ;;  %v1987_v29 = vpop.f32.mrb[37].mxu0 }
 0x1ab   :  { %v533_v31 = vadd.f32 %v532_v19, %v510_v25  ;;  %v1989_v32 = vmax.f32 %v381_v27, 0.0 }
 0x1ac   :  { %v386_v33 = vpop.f32.mrb[38].mxu0 }
 0x1ad   :  { %v480_v34 = vadd.f32 %v479_v23, %v1989_v32  ;;  %v511_v37 = vmul.f32 %v1989_v32, %v1989_v32  ;;  %v387_v41 = vadd.f32 %v386_v33, %v1850_v54  ;;  %v1995_v42 = vpop.f32.mrb[39].mxu0 }
 0x1af   :  { %v534_v45 = vadd.f32 %v533_v31, %v511_v37  ;;  %v1997_v48 = vmax.f32 %v387_v41, 0.0 }
 0x1b0   :  { %v392_v51 = vpop.f32.mrb[40].mxu0 }
 0x1b1   :  { %v481_v59 = vadd.f32 %v480_v34, %v1997_v48  ;;  %v512_v60 = vmul.f32 %v1997_v48, %v1997_v48  ;;  %v393_v63 = vadd.f32 %v392_v51, %v1850_v54  ;;  %v2003_v3 = vpop.f32.mrb[41].mxu0 }
 0x1b3   :  { %v535_v7 = vadd.f32 %v534_v45, %v512_v60  ;;  %v2005_v9 = vmax.f32 %v393_v63, 0.0 }
 0x1b4   :  { %v398_v12 = vpop.f32.mrb[42].mxu0 }
 0x1b5   :  { %v482_v13 = vadd.f32 %v481_v59, %v2005_v9  ;;  %v513_v15 = vmul.f32 %v2005_v9, %v2005_v9  ;;  %v399_v19 = vadd.f32 %v398_v12, %v1850_v54  ;;  %v2011_v21 = vpop.f32.mrb[43].mxu0 }
 0x1b7   :  { %v536_v23 = vadd.f32 %v535_v7, %v513_v15  ;;  %v2013_v25 = vmax.f32 %v399_v19, 0.0 }
 0x1b8   :  { %v404_v27 = vpop.f32.mrb[44].mxu0 }
 0x1b9   :  { %v483_v31 = vadd.f32 %v482_v13, %v2013_v25  ;;  %v514_v33 = vmul.f32 %v2013_v25, %v2013_v25  ;;  %v405_v34 = vadd.f32 %v404_v27, %v1850_v54  ;;  %v2019_v37 = vpop.f32.mrb[45].mxu0 }
 0x1bb   :  { %v537_v41 = vadd.f32 %v536_v23, %v514_v33  ;;  %v2021_v45 = vmax.f32 %v405_v34, 0.0 }
 0x1bc   :  { %v410_v51 = vpop.f32.mrb[46].mxu0 }
 0x1bd   :  { %v484_v59 = vadd.f32 %v483_v31, %v2021_v45  ;;  %v515_v60 = vmul.f32 %v2021_v45, %v2021_v45  ;;  %v411_v63 = vadd.f32 %v410_v51, %v1850_v54  ;;  %v2027_v7 = vpop.f32.mrb[47].mxu0  ;;  %v202_v31 = vsub.s32 1, %v1837_v47 }
 0x1bf   :  { %v538_v12 = vadd.f32 %v537_v41, %v515_v60  ;;  %v2029_v13 = vmax.f32 %v411_v63, 0.0  ;;  %v203_v51 = vrot.slane %v1845_v52, %v202_v31 }
 0x1c1   :  { %v485_v15 = vadd.f32 %v484_v59, %v2029_v13  ;;  %v516_v19 = vmul.f32 %v2029_v13, %v2029_v13  ;;  %v2037_v59 = vadd.f32 %v1831_v38, %v203_v51  ;;  %v2040_v30 = vadd.f32 %v1833_v43, %v203_v51 }
 0x1c2   :  { %v2046_v47 = vadd.f32 %v1839_v49, %v203_v51  ;;  %v2051_v52 = vadd.f32 %v1847_v53, %v203_v51 }
 0x1c3   :  { %v486_v23 = vrot.slane %v485_v15, 4  ;;  %v539_v27 = vadd.f32 %v538_v12, %v516_v19  ;;  %v2043_v12 = vadd.f32 %v1835_v46, %v203_v51 }
 0x1c5   :  { %v487_v33 = vadd.f32 %v486_v23, %v485_v15  ;;  %v540_v34 = vrot.slane %v539_v27, 4 }
 0x1c7   :  { %v488_v2 = vrot.slane %v487_v33, 2  ;;  %v541_v55 = vadd.f32 %v540_v34, %v539_v27  ;;  %v2067_v27 = vadd.f32 %v1857_v61, %v203_v51 }
 0x1c9   :  { %v489_v44 = vadd.f32 %v488_v2, %v487_v33  ;;  %v542_v54 = vrot.slane %v541_v55, 2  ;;  %v2070_v33 = vadd.f32 %v1867_v4, %v203_v51  ;;  %v2112_v4 = vadd.f32 %v1946_v24, %v203_v51 }
 0x1ca   :  { %v2133_v24 = vadd.f32 %v2003_v3, %v203_v51 }
 0x1cb   :  { %v490_v41 = vrot.slane %v489_v44, 1  ;;  %v543_v60 = vadd.f32 %v542_v54, %v541_v55  ;;  %v416_v55 = vmax.f32 %v2037_v59, 0.0  ;;  %v442_v3 = vmax.f32 %v2112_v4, 0.0 }
 0x1cd   :  { %v491_v63 = vadd.f32 %v490_v41, %v489_v44  ;;  %v544_v36 = vrot.slane %v543_v60, 1  ;;  %v2054_v44 = vadd.f32 %v1852_v56, %v203_v51  ;;  %v2095_v41 = vadd.f32 %v1883_v14, %v203_v51 }
 0x1ce   :  { %v2115_v14 = vadd.f32 %v1955_v35, %v203_v51  ;;  %v2136_v35 = vadd.f32 %v2011_v21, %v203_v51 }
 0x1cf   :  { %v2048_v2 = vmul.f32 0.0052083335, %v491_v63  ;;  %v545_v15 = vadd.f32 %v544_v36, %v543_v60  ;;  %v2118_v63 = vadd.f32 %v1963_v50, %v203_v51  ;;  %v2139_v50 = vadd.f32 %v2019_v37, %v203_v51 }
 0x1d0   :  { %2486 = vst [vmem:[#allocation20_spill] sm:$0xff] %v2136_v35  ;;  %v444_v21 = vmax.f32 %v2115_v14, 0.0 }
 0x1d1   :  { %v546_v38 = vmul.f32 0.0052083335, %v545_v15  ;;  %v547_v43 = vmul.f32 %v2048_v2, %v2048_v2  ;;  %v573_v46 = vsub.f32 %v2029_v13, %v2048_v2  ;;  %2487 = vst [vmem:[#allocation21_spill] sm:$0xff] %v2139_v50  ;;  %v550_v4 = vsub.f32 %v1862_v0, %v2048_v2  ;;  %v2488_v0 = vld [vmem:[#allocation15_spill] sm:$0xff] }
 0x1d2   :  { %v551_v14 = vsub.f32 %v1859_v62, %v2048_v2  ;;  %v2489_v62 = vld [vmem:[#allocation16_spill] sm:$0xff]  ;;  %v2495_v13 = vmax.f32 %v2046_v47, 0.0  ;;  %v2499_v47 = vsub.f32 %v1940_v16, %v2048_v2 }
 0x1d3   :  { %v548_v53 = vsub.f32 %v546_v38, %v547_v43  ;;  %v2103_v38 = vadd.f32 %v1911_v39, %v203_v51  ;;  %v2106_v43 = vadd.f32 %v1924_v58, %v203_v51  ;;  %v2124_v39 = vadd.f32 %v1979_v18, %v203_v51 }
 0x1d4   :  { %v2127_v58 = vadd.f32 %v1987_v29, %v203_v51  ;;  %v432_v18 = vmax.f32 %v2095_v41, 0.0  ;;  %v558_v37 = vsub.f32 %v2489_v62, %v2048_v2 }
 0x1d5   :  { %v549_v34 = vmax.f32 %v548_v53, 0.0  ;;  %v2109_v53 = vadd.f32 %v1935_v11, %v203_v51  ;;  %v2130_v11 = vadd.f32 %v1995_v42, %v203_v51  ;;  %v436_v29 = vmax.f32 %v2103_v38, 0.0 }
 0x1d6   :  { %v438_v42 = vmax.f32 %v2106_v43, 0.0  ;;  %v554_v38 = vsub.f32 %v1878_v10, %v2048_v2  ;;  %v555_v43 = vsub.f32 %v1887_v17, %v2048_v2  ;;  %v2492_v10 = vld [vmem:[#allocation19_spill] sm:$0xff] }
 0x1d7   :  { %v574_v15 = vadd.f32 1e-05, %v549_v34  ;;  %v2100_v34 = vadd.f32 %v1897_v26, %v203_v51  ;;  %v2121_v26 = vadd.f32 %v1971_v5, %v203_v51  ;;  %v413_v5 = vadd.f32 %v2027_v7, %v203_v51 }
 0x1d8   :  { %v440_v61 = vmax.f32 %v2109_v53, 0.0  ;;  %v552_v7 = vsub.f32 %v1864_v1, %v2048_v2  ;;  %v553_v51 = vsub.f32 %v1871_v6, %v2048_v2  ;;  %v557_v53 = vsub.f32 %v2488_v0, %v2048_v2  ;;  %v2490_v1 = vld [vmem:[#allocation17_spill] sm:$0xff]  ;;  %v2491_v6 = vld [vmem:[#allocation18_spill] sm:$0xff] }
 0x1d9   :  { %1599 = vrsqrt.f32 %v574_v15  ;;  %v434_v15 = vmax.f32 %v2100_v34, 0.0  ;;  %v462_v34 = vmax.f32 %v413_v5, 0.0  ;;  %v556_v5 = vsub.f32 %v1893_v22, %v2048_v2 }
 0x1da   :  { %v559_v54 = vsub.f32 %v2490_v1, %v2048_v2  ;;  %v560_v31 = vsub.f32 %v2491_v6, %v2048_v2  ;;  %v561_v60 = vsub.f32 %v2492_v10, %v2048_v2  ;;  %v2493_v6 = vmax.f32 %v2040_v30, 0.0 }
 0x1db   :  { %v2494_v10 = vmax.f32 %v2043_v12, 0.0 }
 0x1e3   :  { %v1600_v41 = vpop.eup %1599 }
 0x1e4   :  { %v599_v17 = vmul.f32 %v1600_v41, %v573_v46  ;;  %v576_v22 = vmul.f32 %v1600_v41, %v550_v4  ;;  %v577_v56 = vmul.f32 %v1600_v41, %v551_v14  ;;  %v578_v0 = vmul.f32 %v1600_v41, %v552_v7 }
 0x1e5   :  { %v579_v23 = vmul.f32 %v1600_v41, %v553_v51  ;;  %v580_v36 = vmul.f32 %v1600_v41, %v554_v38  ;;  %v581_v19 = vmul.f32 %v1600_v41, %v555_v43  ;;  %v582_v62 = vmul.f32 %v1600_v41, %v556_v5 }
 0x1e6   :  { %v623_v49 = vadd.f32 %v599_v17, %v462_v34  ;;  %v600_v1 = vadd.f32 %v576_v22, %v416_v55  ;;  %v601_v50 = vadd.f32 %v577_v56, %v2493_v6  ;;  %v602_v35 = vadd.f32 %v578_v0, %v2494_v10 }
 0x1e7   :  { %v603_v46 = vadd.f32 %v579_v23, %v2495_v13  ;;  %v2496_v4 = vmax.f32 %v2051_v52, 0.0  ;;  %v2497_v51 = vmax.f32 %v2054_v44, 0.0  ;;  %v2498_v43 = vmax.f32 %v2067_v27, 0.0 }
 0x1e8   :  { %1358 = vmatprep.mubr.f32.mxu1 %v600_v1  ;;  %v583_v59 = vmul.f32 %v1600_v41, %v557_v53  ;;  %v584_v55 = vmul.f32 %v1600_v41, %v558_v37  ;;  %v585_v30 = vmul.f32 %v1600_v41, %v559_v54  ;;  %v586_v56 = vmul.f32 %v1600_v41, %v560_v31 }
 0x1e9   :  { %v604_v7 = vadd.f32 %v580_v36, %v2496_v4  ;;  %v605_v38 = vadd.f32 %v581_v19, %v2497_v51  ;;  %v606_v34 = vadd.f32 %v582_v62, %v2498_v43  ;;  %1359 = vmatmul.mubr.f32.vlgmr.msra.gmra.mrb[0].mxu1 %v601_v50  ;;  %v587_v12 = vmul.f32 %v1600_v41, %v561_v60  ;;  %v998_v43 = vld [vmem:[#allocation8 + $0x28] sm:$0xff] }
 0x1ea   :  { %v588_v23 = vmul.f32 %v1600_v41, %v2499_v47  ;;  %v2500_v52 = vsub.f32 %v1949_v28, %v2048_v2  ;;  %v2501_v44 = vsub.f32 %v1957_v40, %v2048_v2  ;;  %1361 = vmatprep.mubr.f32.mxu1 %v602_v35  ;;  %v2502_v27 = vmax.f32 %v2070_v33, 0.0  ;;  %v1003_v47 = vld [vmem:[#allocation8 + $0x50] sm:$0xff] }
 0x1eb   :  { %v608_v54 = vadd.f32 %v584_v55, %v432_v18  ;;  %v609_v31 = vadd.f32 %v585_v30, %v434_v15  ;;  %v610_v50 = vadd.f32 %v586_v56, %v436_v29  ;;  %v611_v60 = vadd.f32 %v587_v12, %v438_v42  ;;  %v1000_v55 = vld [vmem:[#allocation8 + $0x38] sm:$0xff]  ;;  %v1001_v30 = vld [vmem:[#allocation8 + $0x40] sm:$0xff] }
 0x1ec   :  { %v589_v36 = vmul.f32 %v1600_v41, %v2500_v52  ;;  %v590_v19 = vmul.f32 %v1600_v41, %v2501_v44  ;;  %v607_v37 = vadd.f32 %v583_v59, %v2502_v27  ;;  %v612_v53 = vadd.f32 %v588_v23, %v440_v61  ;;  %v999_v59 = vld [vmem:[#allocation8 + $0x30] sm:$0xff]  ;;  %v1004_v23 = vld [vmem:[#allocation8 + $0x58] sm:$0xff]  ;;  %v1006_v44 = vld [vmem:[#allocation8 + $0x68] sm:$0xff] }
 0x1ed   :  { %v2503_v5 = vsub.f32 %v1965_v57, %v2048_v2  ;;  %v2504_v17 = vsub.f32 %v1973_v8, %v2048_v2  ;;  %v2505_v35 = vsub.f32 %v1981_v20, %v2048_v2  ;;  %v2506_v18 = vsub.f32 %v1989_v32, %v2048_v2  ;;  %1362 = vmatmul.mubr.f32.gmra.mrb[2].mxu1 %v603_v46  ;;  %v1007_v27 = vld [vmem:[#allocation8 + $0x70] sm:$0xff] }
 0x1ee   :  { %v613_v14 = vadd.f32 %v589_v36, %v442_v3  ;;  %v614_v16 = vadd.f32 %v590_v19, %v444_v21  ;;  %v2507_v61 = vsub.f32 %v1997_v48, %v2048_v2  ;;  %v2508_v57 = vsub.f32 %v2005_v9, %v2048_v2  ;;  %1364 = vmatprep.mubr.f32.mxu1 %v604_v7  ;;  %v1005_v36 = vld [vmem:[#allocation8 + $0x60] sm:$0xff] }
 0x1ef   :  { %v591_v28 = vmul.f32 %v1600_v41, %v2503_v5  ;;  %v592_v40 = vmul.f32 %v1600_v41, %v2504_v17  ;;  %v593_v33 = vmul.f32 %v1600_v41, %v2505_v35  ;;  %v594_v15 = vmul.f32 %v1600_v41, %v2506_v18 }
 0x1f0   :  { %v595_v29 = vmul.f32 %v1600_v41, %v2507_v61  ;;  %v596_v42 = vmul.f32 %v1600_v41, %v2508_v57  ;;  %v2509_v8 = vsub.f32 %v2013_v25, %v2048_v2  ;;  %v2510_v20 = vsub.f32 %v2021_v45, %v2048_v2  ;;  %v2517_v2 = vld [vmem:[#allocation20_spill] sm:$0xff] }
 0x1f1   :  { %v2511_v32 = vmax.f32 %v2118_v63, 0.0  ;;  %v2512_v0 = vmax.f32 %v2121_v26, 0.0  ;;  %v2513_v62 = vmax.f32 %v2124_v39, 0.0  ;;  %v2514_v9 = vmax.f32 %v2127_v58, 0.0  ;;  %v2519_v63 = vld [vmem:[#allocation21_spill] sm:$0xff]  ;;  %1365 = vmatmul.mubr.f32.gmra.mrb[4].mxu1 %v605_v38  ;;  %v993_v26 = vld [vmem:[#allocation8] sm:$0xff] }
 0x1f2   :  { %v597_v3 = vmul.f32 %v1600_v41, %v2509_v8  ;;  %v598_v21 = vmul.f32 %v1600_v41, %v2510_v20  ;;  %v2515_v25 = vmax.f32 %v2130_v11, 0.0  ;;  %v2516_v13 = vmax.f32 %v2133_v24, 0.0  ;;  %1367 = vmatprep.mubr.f32.mxu1 %v606_v34  ;;  %v994_v39 = vld [vmem:[#allocation8 + $0x8] sm:$0xff]  ;;  %v995_v11 = vld [vmem:[#allocation8 + $0x10] sm:$0xff]  ;;  %v996_v24 = vld [vmem:[#allocation8 + $0x18] sm:$0xff] }
 0x1f3   :  { %v615_v22 = vadd.f32 %v591_v28, %v2511_v32  ;;  %v616_v48 = vadd.f32 %v592_v40, %v2512_v0  ;;  %v617_v1 = vadd.f32 %v593_v33, %v2513_v62  ;;  %v618_v6 = vadd.f32 %v594_v15, %v2514_v9  ;;  %v997_v38 = vld [vmem:[#allocation8 + $0x20] sm:$0xff] }
 0x1f4   :  { %v619_v10 = vadd.f32 %v595_v29, %v2515_v25  ;;  %v620_v45 = vadd.f32 %v596_v42, %v2516_v13  ;;  %v2518_v41 = vmax.f32 %v2517_v2, 0.0  ;;  %v2520_v4 = vmax.f32 %v2519_v63, 0.0 }
 0x1f5   :  { %1368 = vmatmul.mubr.f32.gmra.mrb[6].mxu1 %v607_v37  ;;  %v1558_v58 = vpack.c.bf16 %v994_v39, %v993_v26  ;;  %v1562_v51 = vpack.c.bf16 %v996_v24, %v995_v11  ;;  %v1566_v34 = vpack.c.bf16 %v998_v43, %v997_v38  ;;  %v1570_v56 = vpack.c.bf16 %v1000_v55, %v999_v59  ;;  %v1008_v37 = vld [vmem:[#allocation8 + $0x78] sm:$0xff] }
 0x1f6   :  { %v621_v46 = vadd.f32 %v597_v3, %v2518_v41  ;;  %v622_v7 = vadd.f32 %v598_v21, %v2520_v4  ;;  %1370 = vmatprep.mubr.f32.mxu1 %v608_v54  ;;  %v1578_v52 = vpack.c.bf16 %v1004_v23, %v1003_v47  ;;  %v1582_v19 = vpack.c.bf16 %v1006_v44, %v1005_v36 }
 0x1f7   :  { %1559 = vmatprep.subr.bf16.mxu1 %v1558_v58  ;;  %v1586_v54 = vpack.c.bf16 %v1008_v37, %v1007_v27 }
 0x1f8   :  { %1561 = vmatpush3.bf16.msra.mxu1 %v1558_v58 }
 0x1f9   :  { %1371 = vmatmul.mubr.f32.gmra.mrb[8].mxu1 %v609_v31  ;;  %1563 = vmatprep.subr.bf16.mxu1 %v1562_v51  ;;  %v2252_v31 = vld [vmem:[%s2470_s4] ss:$0 sm:$0xff] }
 0x1fa   :  { %1373 = vmatprep.mubr.f32.mxu1 %v610_v50 }
 0x1fc   :  { %1565 = vmatpush3.bf16.msra.mxu1 %v1562_v51 }
 0x1fd   :  { %1374 = vmatmul.mubr.f32.gmra.mrb[10].mxu1 %v611_v60  ;;  %1567 = vmatprep.subr.bf16.mxu1 %v1566_v34 }
 0x1fe   :  { %1376 = vmatprep.mubr.f32.mxu1 %v612_v53 }
 0x200   :  { %1569 = vmatpush3.bf16.msra.mxu1 %v1566_v34 }
 0x201   :  { %1377 = vmatmul.mubr.f32.gmra.mrb[12].mxu1 %v613_v14  ;;  %1571 = vmatprep.subr.bf16.mxu1 %v1570_v56 }
 0x202   :  { %1379 = vmatprep.mubr.f32.mxu1 %v614_v16 }
 0x204   :  { %1573 = vmatpush3.bf16.msra.mxu1 %v1570_v56 }
 0x205   :  { %1380 = vmatmul.mubr.f32.gmra.mrb[14].mxu1 %v615_v22 }
 0x206   :  { %1382 = vmatprep.mubr.f32.mxu1 %v616_v48 }
 0x209   :  { %1383 = vmatmul.mubr.f32.gmra.mrb[16].mxu1 %v617_v1 }
 0x20a   :  { %1385 = vmatprep.mubr.f32.mxu1 %v618_v6 }
 0x20d   :  { %1386 = vmatmul.mubr.f32.gmra.mrb[18].mxu1 %v619_v10 }
 0x20e   :  { %1388 = vmatprep.mubr.f32.mxu1 %v620_v45 }
 0x211   :  { %1389 = vmatmul.mubr.f32.gmra.mrb[20].mxu1 %v621_v46 }
 0x212   :  { %1391 = vmatprep.mubr.f32.mxu1 %v622_v7 }
 0x215   :  { %1392 = vmatmul.mubr.f32.gmra.mrb[22].mxu1 %v623_v49  ;;  %v1002_v49 = vld [vmem:[#allocation8 + $0x48] sm:$0xff] }
 0x216   :  { %v1574_v12 = vpack.c.bf16 %v1002_v49, %v1001_v30 }
 0x218   :  { %1575 = vmatprep.subr.bf16.mxu1 %v1574_v12 }
 0x219   :  { %1577 = vmatpush3.bf16.msra.mxu1 %v1574_v12 }
 0x21a   :  { %1579 = vmatprep.subr.bf16.mxu1 %v1578_v52 }
 0x21d   :  { %1581 = vmatpush3.bf16.msra.mxu1 %v1578_v52 }
 0x21e   :  { %1583 = vmatprep.subr.bf16.mxu1 %v1582_v19 }
 0x221   :  { %1585 = vmatpush3.bf16.msra.mxu1 %v1582_v19 }
 0x222   :  { %1587 = vmatprep.subr.bf16.mxu1 %v1586_v54 }
 0x225   :  { %1589 = vmatpush3.bf16.msra.mxu1 %v1586_v54 }
 0x2bc   :  { %v1360_v50 = vpop.f32.mrb[0].mxu1 }
 0x2bd   :  { %v719_v60 = vadd.f32 %v1360_v50, %v2252_v31  ;;  %v713_v53 = vpop.f32.mrb[1].mxu1 }
 0x2be   :  { %v714_v14 = vadd.f32 %v2252_v31, %v713_v53 }
 0x2bf   :  { %v2256_v16 = vmax.f32 %v719_v60, 0.0 }
 0x2c0   :  { %v2258_v5 = vmax.f32 %v714_v14, 0.0  ;;  %v1363_v28 = vpop.f32.mrb[2].mxu1 }
 0x2c1   :  { %v887_v17 = vmul.f32 %v2256_v16, %v2256_v16  ;;  %v729_v40 = vadd.f32 %v1363_v28, %v2252_v31  ;;  %v723_v35 = vpop.f32.mrb[3].mxu1 }
 0x2c2   :  { %v856_v33 = vadd.f32 %v2256_v16, %v2258_v5  ;;  %v886_v18 = vmul.f32 %v2258_v5, %v2258_v5  ;;  %v724_v15 = vadd.f32 %v2252_v31, %v723_v35 }
 0x2c3   :  { %v2268_v29 = vmax.f32 %v729_v40, 0.0 }
 0x2c4   :  { %v910_v61 = vadd.f32 %v887_v17, %v886_v18  ;;  %v2270_v57 = vmax.f32 %v724_v15, 0.0  ;;  %v1366_v42 = vpop.f32.mrb[4].mxu1 }
 0x2c5   :  { %v739_v8 = vadd.f32 %v1366_v42, %v2252_v31  ;;  %v733_v3 = vpop.f32.mrb[5].mxu1  ;;  %v889_v0 = vmul.f32 %v2268_v29, %v2268_v29 }
 0x2c6   :  { %v857_v20 = vadd.f32 %v856_v33, %v2270_v57  ;;  %v888_v21 = vmul.f32 %v2270_v57, %v2270_v57  ;;  %v734_v32 = vadd.f32 %v2252_v31, %v733_v3 }
 0x2c7   :  { %v2277_v22 = vmax.f32 %v739_v8, 0.0 }
 0x2c8   :  { %v911_v48 = vadd.f32 %v910_v61, %v888_v21  ;;  %v2281_v62 = vmax.f32 %v734_v32, 0.0  ;;  %v858_v1 = vadd.f32 %v857_v20, %v2268_v29  ;;  %v1369_v9 = vpop.f32.mrb[6].mxu1 }
 0x2c9   :  { %v749_v6 = vadd.f32 %v1369_v9, %v2252_v31  ;;  %v743_v25 = vpop.f32.mrb[7].mxu1  ;;  %v891_v41 = vmul.f32 %v2277_v22, %v2277_v22 }
 0x2ca   :  { %v859_v10 = vadd.f32 %v858_v1, %v2281_v62  ;;  %v890_v13 = vmul.f32 %v2281_v62, %v2281_v62  ;;  %v912_v45 = vadd.f32 %v911_v48, %v889_v0  ;;  %v744_v2 = vadd.f32 %v2252_v31, %v743_v25 }
 0x2cb   :  { %v2291_v63 = vmax.f32 %v749_v6, 0.0 }
 0x2cc   :  { %v913_v46 = vadd.f32 %v912_v45, %v890_v13  ;;  %v2293_v4 = vmax.f32 %v744_v2, 0.0  ;;  %v860_v7 = vadd.f32 %v859_v10, %v2277_v22  ;;  %v1372_v26 = vpop.f32.mrb[8].mxu1 }
 0x2cd   :  { %v759_v39 = vadd.f32 %v1372_v26, %v2252_v31  ;;  %v753_v58 = vpop.f32.mrb[9].mxu1  ;;  %v893_v34 = vmul.f32 %v2291_v63, %v2291_v63 }
 0x2ce   :  { %v861_v11 = vadd.f32 %v860_v7, %v2293_v4  ;;  %v892_v24 = vmul.f32 %v2293_v4, %v2293_v4  ;;  %v914_v51 = vadd.f32 %v913_v46, %v891_v41  ;;  %v754_v38 = vadd.f32 %v2252_v31, %v753_v58 }
 0x2cf   :  { %v2301_v43 = vmax.f32 %v759_v39, 0.0 }
 0x2d0   :  { %v915_v59 = vadd.f32 %v914_v51, %v892_v24  ;;  %v2305_v55 = vmax.f32 %v754_v38, 0.0  ;;  %v862_v30 = vadd.f32 %v861_v11, %v2291_v63  ;;  %v1375_v56 = vpop.f32.mrb[10].mxu1 }
 0x2d1   :  { %v769_v49 = vadd.f32 %v1375_v56, %v2252_v31  ;;  %v763_v12 = vpop.f32.mrb[11].mxu1  ;;  %v895_v44 = vmul.f32 %v2301_v43, %v2301_v43 }
 0x2d2   :  { %v863_v47 = vadd.f32 %v862_v30, %v2305_v55  ;;  %v894_v23 = vmul.f32 %v2305_v55, %v2305_v55  ;;  %v916_v52 = vadd.f32 %v915_v59, %v893_v34  ;;  %v764_v36 = vadd.f32 %v2252_v31, %v763_v12 }
 0x2d3   :  { %v2315_v27 = vmax.f32 %v769_v49, 0.0 }
 0x2d4   :  { %v917_v19 = vadd.f32 %v916_v52, %v894_v23  ;;  %v2317_v37 = vmax.f32 %v764_v36, 0.0  ;;  %v864_v54 = vadd.f32 %v863_v47, %v2301_v43  ;;  %v1378_v50 = vpop.f32.mrb[12].mxu1 }
 0x2d5   :  { %v779_v60 = vadd.f32 %v1378_v50, %v2252_v31  ;;  %v773_v53 = vpop.f32.mrb[13].mxu1  ;;  %v897_v33 = vmul.f32 %v2315_v27, %v2315_v27 }
 0x2d6   :  { %v865_v14 = vadd.f32 %v864_v54, %v2317_v37  ;;  %v896_v28 = vmul.f32 %v2317_v37, %v2317_v37  ;;  %v918_v17 = vadd.f32 %v917_v19, %v895_v44  ;;  %v774_v40 = vadd.f32 %v2252_v31, %v773_v53 }
 0x2d7   :  { %v2325_v35 = vmax.f32 %v779_v60, 0.0 }
 0x2d8   :  { %v919_v18 = vadd.f32 %v918_v17, %v896_v28  ;;  %v2329_v15 = vmax.f32 %v774_v40, 0.0  ;;  %v866_v61 = vadd.f32 %v865_v14, %v2315_v27  ;;  %v1381_v42 = vpop.f32.mrb[14].mxu1 }
 0x2d9   :  { %v789_v8 = vadd.f32 %v1381_v42, %v2252_v31  ;;  %v783_v3 = vpop.f32.mrb[15].mxu1  ;;  %v899_v48 = vmul.f32 %v2325_v35, %v2325_v35 }
 0x2da   :  { %v867_v20 = vadd.f32 %v866_v61, %v2329_v15  ;;  %v898_v21 = vmul.f32 %v2329_v15, %v2329_v15  ;;  %v920_v32 = vadd.f32 %v919_v18, %v897_v33  ;;  %v784_v0 = vadd.f32 %v2252_v31, %v783_v3 }
 0x2db   :  { %v2339_v9 = vmax.f32 %v789_v8, 0.0 }
 0x2dc   :  { %v921_v1 = vadd.f32 %v920_v32, %v898_v21  ;;  %v2341_v6 = vmax.f32 %v784_v0, 0.0  ;;  %v868_v25 = vadd.f32 %v867_v20, %v2325_v35  ;;  %v1384_v10 = vpop.f32.mrb[16].mxu1 }
 0x2dd   :  { %v799_v13 = vadd.f32 %v1384_v10, %v2252_v31  ;;  %v793_v45 = vpop.f32.mrb[17].mxu1  ;;  %v901_v39 = vmul.f32 %v2339_v9, %v2339_v9 }
 0x2de   :  { %v869_v2 = vadd.f32 %v868_v25, %v2341_v6  ;;  %v900_v41 = vmul.f32 %v2341_v6, %v2341_v6  ;;  %v922_v46 = vadd.f32 %v921_v1, %v899_v48  ;;  %v794_v7 = vadd.f32 %v2252_v31, %v793_v45 }
 0x2df   :  { %v2349_v26 = vmax.f32 %v799_v13, 0.0 }
 0x2e0   :  { %v923_v58 = vadd.f32 %v922_v46, %v900_v41  ;;  %v2353_v11 = vmax.f32 %v794_v7, 0.0  ;;  %v870_v24 = vadd.f32 %v869_v2, %v2339_v9  ;;  %v1387_v51 = vpop.f32.mrb[18].mxu1 }
 0x2e1   :  { %v809_v38 = vadd.f32 %v1387_v51, %v2252_v31  ;;  %v803_v34 = vpop.f32.mrb[19].mxu1  ;;  %v903_v12 = vmul.f32 %v2349_v26, %v2349_v26 }
 0x2e2   :  { %v871_v59 = vadd.f32 %v870_v24, %v2353_v11  ;;  %v902_v30 = vmul.f32 %v2353_v11, %v2353_v11  ;;  %v924_v56 = vadd.f32 %v923_v58, %v901_v39  ;;  %v804_v49 = vadd.f32 %v2252_v31, %v803_v34 }
 0x2e3   :  { %v2363_v23 = vmax.f32 %v809_v38, 0.0 }
 0x2e4   :  { %v925_v47 = vadd.f32 %v924_v56, %v902_v30  ;;  %v2365_v52 = vmax.f32 %v804_v49, 0.0  ;;  %v872_v36 = vadd.f32 %v871_v59, %v2349_v26  ;;  %v1390_v44 = vpop.f32.mrb[20].mxu1 }
 0x2e5   :  { %v819_v19 = vadd.f32 %v1390_v44, %v2252_v31  ;;  %v813_v54 = vpop.f32.mrb[21].mxu1  ;;  %v905_v17 = vmul.f32 %v2363_v23, %v2363_v23 }
 0x2e6   :  { %v873_v50 = vadd.f32 %v872_v36, %v2365_v52  ;;  %v904_v60 = vmul.f32 %v2365_v52, %v2365_v52  ;;  %v926_v53 = vadd.f32 %v925_v47, %v903_v12  ;;  %v814_v14 = vadd.f32 %v2252_v31, %v813_v54 }
 0x2e7   :  { %v2373_v28 = vmax.f32 %v819_v19, 0.0 }
 0x2e8   :  { %v927_v40 = vadd.f32 %v926_v53, %v904_v60  ;;  %v2377_v33 = vmax.f32 %v814_v14, 0.0  ;;  %v874_v18 = vadd.f32 %v873_v50, %v2363_v23  ;;  %v1393_v61 = vpop.f32.mrb[22].mxu1 }
 0x2e9   :  { %v829_v42 = vadd.f32 %v1393_v61, %v2252_v31  ;;  %v823_v8 = vpop.f32.mrb[23].mxu1  ;;  %v907_v0 = vmul.f32 %v2373_v28, %v2373_v28 }
 0x2ea   :  { %v875_v3 = vadd.f32 %v874_v18, %v2377_v33  ;;  %v906_v20 = vmul.f32 %v2377_v33, %v2377_v33  ;;  %v928_v21 = vadd.f32 %v927_v40, %v905_v17  ;;  %v824_v32 = vadd.f32 %v2252_v31, %v823_v8 }
 0x2eb   :  { %v2387_v1 = vmax.f32 %v829_v42, 0.0 }
 0x2ec   :  { %v929_v48 = vadd.f32 %v928_v21, %v906_v20  ;;  %v2389_v25 = vmax.f32 %v824_v32, 0.0  ;;  %v876_v10 = vadd.f32 %v875_v3, %v2373_v28 }
 0x2ed   :  { %v909_v41 = vmul.f32 %v2387_v1, %v2387_v1 }
 0x2ee   :  { %v877_v13 = vadd.f32 %v876_v10, %v2389_v25  ;;  %v908_v45 = vmul.f32 %v2389_v25, %v2389_v25  ;;  %v930_v2 = vadd.f32 %v929_v48, %v907_v0 }
 0x2f0   :  { %v878_v31 = vadd.f32 %v877_v13, %v2387_v1  ;;  %v931_v46 = vadd.f32 %v930_v2, %v908_v45 }
 0x2f2   :  { %v879_v7 = vrot.slane %v878_v31, 4  ;;  %v932_v39 = vadd.f32 %v931_v46, %v909_v41 }
 0x2f4   :  { %v880_v58 = vadd.f32 %v879_v7, %v878_v31  ;;  %v933_v24 = vrot.slane %v932_v39, 4 }
 0x2f6   :  { %v881_v51 = vrot.slane %v880_v58, 2  ;;  %v934_v38 = vadd.f32 %v933_v24, %v932_v39 }
 0x2f8   :  { %v882_v34 = vadd.f32 %v881_v51, %v880_v58  ;;  %v935_v59 = vrot.slane %v934_v38, 2  ;;  %v2425_v51 = vld [vmem:[%s2472_s6] ss:$0 sm:$0xff]  ;;  %s1729_s6 = smov [#allocation10]  }
 0x2f9   :  { %s1230_s30 = sshll.u32 %s1729_s6, 4  ;;  %s1231_s30 = int_to_ptr.vmem [resolvable:$true] %s1230_s30 }
 0x2fa   :  { %v883_v30 = vrot.slane %v882_v34, 1  ;;  %v936_v56 = vadd.f32 %v935_v59, %v934_v38  ;;  %s1691_s8 = scalar_lea.vmem %s1231_s30, 3072  ;;  %p1696_p5 = scmp.lt.s32.totalorder %s1231_s30, %s1231_s30 }
 0x2fb   :  { %p1692_p4 = scmp.ne.s32.totalorder %s1231_s30, %s1691_s8  ;;  %p1697_p6 = scmp.lt.s32.totalorder %s1691_s8, %s1691_s8 }
 0x2fc   :  { %v884_v49 = vadd.f32 %v883_v30, %v882_v34  ;;  %v937_v12 = vrot.slane %v936_v56, 1 }
 0x2fd   :  { %p1698_p7 = por %p1697_p6, %p1696_p5 }
 0x2fe   :  { %v885_v47 = vmul.f32 0.0052083335, %v884_v49  ;;  %v938_v36 = vadd.f32 %v937_v12, %v936_v56 }
 0x2ff   :  { %p1699_p8 = pnand %p1698_p7, %p1692_p4 }
 0x300   :  { %v939_v44 = vmul.f32 0.0052083335, %v938_v36  ;;  %v940_v19 = vmul.f32 %v885_v47, %v885_v47  ;;  %v965_v54 = vsub.f32 %v2389_v25, %v885_v47  ;;  %v943_v50 = vsub.f32 %v2258_v5, %v885_v47 }
 0x301   :  { %v944_v60 = vsub.f32 %v2256_v16, %v885_v47  ;;  %v945_v53 = vsub.f32 %v2270_v57, %v885_v47  ;;  %v946_v14 = vsub.f32 %v2268_v29, %v885_v47  ;;  %v947_v17 = vsub.f32 %v2281_v62, %v885_v47 }
 0x302   :  { %v941_v40 = vsub.f32 %v939_v44, %v940_v19  ;;  %v948_v18 = vsub.f32 %v2277_v22, %v885_v47  ;;  %v949_v61 = vsub.f32 %v2293_v4, %v885_v47  ;;  %v950_v42 = vsub.f32 %v2291_v63, %v885_v47 }
 0x303   :  { %v951_v8 = vsub.f32 %v2305_v55, %v885_v47  ;;  %v952_v3 = vsub.f32 %v2301_v43, %v885_v47  ;;  %v953_v5 = vsub.f32 %v2317_v37, %v885_v47  ;;  %v954_v16 = vsub.f32 %v2315_v27, %v885_v47 }
 0x304   :  { %v942_v57 = vmax.f32 %v941_v40, 0.0  ;;  %v955_v29 = vsub.f32 %v2329_v15, %v885_v47  ;;  %v956_v62 = vsub.f32 %v2325_v35, %v885_v47  ;;  %v957_v20 = vsub.f32 %v2341_v6, %v885_v47 }
 0x305   :  { %v958_v22 = vsub.f32 %v2339_v9, %v885_v47  ;;  %v959_v4 = vsub.f32 %v2353_v11, %v885_v47  ;;  %v960_v63 = vsub.f32 %v2349_v26, %v885_v47  ;;  %v961_v55 = vsub.f32 %v2365_v52, %v885_v47 }
 0x306   :  { %v967_v43 = vadd.f32 1e-05, %v942_v57  ;;  %v962_v37 = vsub.f32 %v2363_v23, %v885_v47  ;;  %v963_v27 = vsub.f32 %v2377_v33, %v885_v47  ;;  %v964_v21 = vsub.f32 %v2373_v28, %v885_v47 }
 0x307   :  { %v966_v15 = vsub.f32 %v2387_v1, %v885_v47 }
 0x308   :  { %1601 = vrsqrt.f32 %v967_v43 }
 0x312   :  { %v1602_v35 = vpop.eup %1601 }
 0x313   :  { %v969_v6 = vmul.f32 %v1602_v35, %v943_v50  ;;  %v970_v32 = vmul.f32 %v1602_v35, %v944_v60  ;;  %v971_v9 = vmul.f32 %v1602_v35, %v945_v53  ;;  %v972_v0 = vmul.f32 %v1602_v35, %v946_v14 }
 0x314   :  { %v973_v11 = vmul.f32 %v1602_v35, %v947_v17  ;;  %v974_v48 = vmul.f32 %v1602_v35, %v948_v18  ;;  %v975_v26 = vmul.f32 %v1602_v35, %v949_v61  ;;  %v976_v25 = vmul.f32 %v1602_v35, %v950_v42 }
 0x315   :  { %1426 = vmatprep.mubr.f32.mxu1 %v969_v6  ;;  %v977_v52 = vmul.f32 %v1602_v35, %v951_v8  ;;  %v978_v10 = vmul.f32 %v1602_v35, %v952_v3  ;;  %v979_v23 = vmul.f32 %v1602_v35, %v953_v5  ;;  %v980_v13 = vmul.f32 %v1602_v35, %v954_v16 }
 0x316   :  { %1427 = vmatmul.mubr.f32.vlgmr.msra.gmra.mrb[24].mxu1 %v970_v32  ;;  %v981_v33 = vmul.f32 %v1602_v35, %v955_v29  ;;  %v982_v28 = vmul.f32 %v1602_v35, %v956_v62  ;;  %v983_v45 = vmul.f32 %v1602_v35, %v957_v20  ;;  %v984_v1 = vmul.f32 %v1602_v35, %v958_v22 }
 0x317   :  { %1429 = vmatprep.mubr.f32.mxu1 %v971_v9  ;;  %v985_v2 = vmul.f32 %v1602_v35, %v959_v4  ;;  %v986_v41 = vmul.f32 %v1602_v35, %v960_v63  ;;  %v987_v31 = vmul.f32 %v1602_v35, %v961_v55  ;;  %v988_v46 = vmul.f32 %v1602_v35, %v962_v37 }
 0x318   :  { %v989_v7 = vmul.f32 %v1602_v35, %v963_v27  ;;  %v990_v39 = vmul.f32 %v1602_v35, %v964_v21  ;;  %v991_v58 = vmul.f32 %v1602_v35, %v965_v54  ;;  %v992_v24 = vmul.f32 %v1602_v35, %v966_v15 }
 0x31a   :  { %1430 = vmatmul.mubr.f32.gmra.mrb[26].mxu1 %v972_v0 }
 0x31b   :  { %1432 = vmatprep.mubr.f32.mxu1 %v973_v11 }
 0x31e   :  { %1433 = vmatmul.mubr.f32.gmra.mrb[28].mxu1 %v974_v48 }
 0x31f   :  { %1435 = vmatprep.mubr.f32.mxu1 %v975_v26 }
 0x322   :  { %1436 = vmatmul.mubr.f32.gmra.mrb[30].mxu1 %v976_v25 }
 0x323   :  { %1438 = vmatprep.mubr.f32.mxu1 %v977_v52 }
 0x326   :  { %1439 = vmatmul.mubr.f32.gmra.mrb[32].mxu1 %v978_v10 }
 0x327   :  { %1441 = vmatprep.mubr.f32.mxu1 %v979_v23 }
 0x32a   :  { %1442 = vmatmul.mubr.f32.gmra.mrb[34].mxu1 %v980_v13 }
 0x32b   :  { %1444 = vmatprep.mubr.f32.mxu1 %v981_v33 }
 0x32e   :  { %1445 = vmatmul.mubr.f32.gmra.mrb[36].mxu1 %v982_v28 }
 0x32f   :  { %1447 = vmatprep.mubr.f32.mxu1 %v983_v45 }
 0x332   :  { %1448 = vmatmul.mubr.f32.gmra.mrb[38].mxu1 %v984_v1 }
 0x333   :  { %1450 = vmatprep.mubr.f32.mxu1 %v985_v2 }
 0x336   :  { %1451 = vmatmul.mubr.f32.gmra.mrb[40].mxu1 %v986_v41 }
 0x337   :  { %1453 = vmatprep.mubr.f32.mxu1 %v987_v31 }
 0x33a   :  { %1454 = vmatmul.mubr.f32.gmra.mrb[42].mxu1 %v988_v46 }
 0x33b   :  { %1456 = vmatprep.mubr.f32.mxu1 %v989_v7 }
 0x33e   :  { %1457 = vmatmul.mubr.f32.gmra.mrb[44].mxu1 %v990_v39 }
 0x33f   :  { %1459 = vmatprep.mubr.f32.mxu1 %v991_v58 }
 0x342   :  { %1460 = vmatmul.mubr.f32.gmra.mrb[46].mxu1 %v992_v24 }
 0x3e9   :  { %v1428_v38 = vpop.f32.mrb[24].mxu1 }
 0x3ea   :  { %v1088_v34 = vadd.f32 %v1428_v38, %v2425_v51  ;;  %v1082_v59 = vpop.f32.mrb[25].mxu1 }
 0x3eb   :  { %v1083_v30 = vadd.f32 %v2425_v51, %v1082_v59 }
 0x3ec   :  { %1202 = vst [vmem:[#allocation10 + $0x8] sm:$0xff] %v1088_v34 }
 0x3ed   :  { %1201 = vst [vmem:[#allocation10] sm:$0xff] %v1083_v30  ;;  %v1431_v56 = vpop.f32.mrb[26].mxu1 }
 0x3ee   :  { %v1098_v49 = vadd.f32 %v1431_v56, %v2425_v51  ;;  %v1092_v12 = vpop.f32.mrb[27].mxu1 }
 0x3ef   :  { %v1093_v47 = vadd.f32 %v2425_v51, %v1092_v12 }
 0x3f0   :  { %1204 = vst [vmem:[#allocation10 + $0x18] sm:$0xff] %v1098_v49 }
 0x3f1   :  { %1203 = vst [vmem:[#allocation10 + $0x10] sm:$0xff] %v1093_v47  ;;  %v1434_v36 = vpop.f32.mrb[28].mxu1 }
 0x3f2   :  { %v1108_v44 = vadd.f32 %v1434_v36, %v2425_v51  ;;  %v1102_v19 = vpop.f32.mrb[29].mxu1 }
 0x3f3   :  { %v1103_v54 = vadd.f32 %v2425_v51, %v1102_v19 }
 0x3f4   :  { %1206 = vst [vmem:[#allocation10 + $0x28] sm:$0xff] %v1108_v44 }
 0x3f5   :  { %1205 = vst [vmem:[#allocation10 + $0x20] sm:$0xff] %v1103_v54  ;;  %v1437_v50 = vpop.f32.mrb[30].mxu1 }
 0x3f6   :  { %v1118_v60 = vadd.f32 %v1437_v50, %v2425_v51  ;;  %v1112_v53 = vpop.f32.mrb[31].mxu1 }
 0x3f7   :  { %v1113_v14 = vadd.f32 %v2425_v51, %v1112_v53 }
 0x3f8   :  { %1208 = vst [vmem:[#allocation10 + $0x38] sm:$0xff] %v1118_v60 }
 0x3f9   :  { %1207 = vst [vmem:[#allocation10 + $0x30] sm:$0xff] %v1113_v14  ;;  %v1440_v17 = vpop.f32.mrb[32].mxu1 }
 0x3fa   :  { %v1128_v40 = vadd.f32 %v1440_v17, %v2425_v51  ;;  %v1122_v18 = vpop.f32.mrb[33].mxu1 }
 0x3fb   :  { %v1123_v61 = vadd.f32 %v2425_v51, %v1122_v18 }
 0x3fc   :  { %1210 = vst [vmem:[#allocation10 + $0x48] sm:$0xff] %v1128_v40 }
 0x3fd   :  { %1209 = vst [vmem:[#allocation10 + $0x40] sm:$0xff] %v1123_v61  ;;  %v1443_v42 = vpop.f32.mrb[34].mxu1 }
 0x3fe   :  { %v1138_v8 = vadd.f32 %v1443_v42, %v2425_v51  ;;  %v1132_v3 = vpop.f32.mrb[35].mxu1 }
 0x3ff   :  { %v1133_v5 = vadd.f32 %v2425_v51, %v1132_v3 }
 0x400   :  { %1212 = vst [vmem:[#allocation10 + $0x58] sm:$0xff] %v1138_v8 }
 0x401   :  { %1211 = vst [vmem:[#allocation10 + $0x50] sm:$0xff] %v1133_v5  ;;  %v1446_v16 = vpop.f32.mrb[36].mxu1 }
 0x402   :  { %v1148_v57 = vadd.f32 %v1446_v16, %v2425_v51  ;;  %v1142_v29 = vpop.f32.mrb[37].mxu1 }
 0x403   :  { %v1143_v62 = vadd.f32 %v2425_v51, %v1142_v29 }
 0x404   :  { %1214 = vst [vmem:[#allocation10 + $0x68] sm:$0xff] %v1148_v57 }
 0x405   :  { %1213 = vst [vmem:[#allocation10 + $0x60] sm:$0xff] %v1143_v62  ;;  %v1449_v20 = vpop.f32.mrb[38].mxu1 }
 0x406   :  { %v1158_v22 = vadd.f32 %v1449_v20, %v2425_v51  ;;  %v1152_v4 = vpop.f32.mrb[39].mxu1 }
 0x407   :  { %v1153_v63 = vadd.f32 %v2425_v51, %v1152_v4 }
 0x408   :  { %1216 = vst [vmem:[#allocation10 + $0x78] sm:$0xff] %v1158_v22 }
 0x409   :  { %1215 = vst [vmem:[#allocation10 + $0x70] sm:$0xff] %v1153_v63  ;;  %v1452_v55 = vpop.f32.mrb[40].mxu1 }
 0x40a   :  { %v1168_v43 = vadd.f32 %v1452_v55, %v2425_v51  ;;  %v1162_v37 = vpop.f32.mrb[41].mxu1 }
 0x40b   :  { %v1163_v27 = vadd.f32 %v2425_v51, %v1162_v37 }
 0x40c   :  { %1218 = vst [vmem:[#allocation10 + $0x88] sm:$0xff] %v1168_v43 }
 0x40d   :  { %1217 = vst [vmem:[#allocation10 + $0x80] sm:$0xff] %v1163_v27  ;;  %v1455_v21 = vpop.f32.mrb[42].mxu1 }
 0x40e   :  { %v1178_v15 = vadd.f32 %v1455_v21, %v2425_v51  ;;  %v1172_v35 = vpop.f32.mrb[43].mxu1 }
 0x40f   :  { %v1173_v6 = vadd.f32 %v2425_v51, %v1172_v35 }
 0x410   :  { %1220 = vst [vmem:[#allocation10 + $0x98] sm:$0xff] %v1178_v15 }
 0x411   :  { %1219 = vst [vmem:[#allocation10 + $0x90] sm:$0xff] %v1173_v6  ;;  %v1458_v32 = vpop.f32.mrb[44].mxu1 }
 0x412   :  { %v1188_v9 = vadd.f32 %v1458_v32, %v2425_v51  ;;  %v1182_v0 = vpop.f32.mrb[45].mxu1 }
 0x413   :  { %v1183_v11 = vadd.f32 %v2425_v51, %v1182_v0 }
 0x414   :  { %1222 = vst [vmem:[#allocation10 + $0xa8] sm:$0xff] %v1188_v9 }
 0x415   :  { %1221 = vst [vmem:[#allocation10 + $0xa0] sm:$0xff] %v1183_v11  ;;  %v1461_v48 = vpop.f32.mrb[46].mxu1 }
 0x416   :  { %v1198_v26 = vadd.f32 %v1461_v48, %v2425_v51  ;;  %v1192_v25 = vpop.f32.mrb[47].mxu1 }
 0x417   :  { %v1193_v52 = vadd.f32 %v2425_v51, %v1192_v25 }
 0x418   :  { %1224 = vst [vmem:[#allocation10 + $0xb8] sm:$0xff] %v1198_v26 }
 0x419   :  { %1223 = vst [vmem:[#allocation10 + $0xb0] sm:$0xff] %v1193_v52 }
 0x41a   :  { %1702 = shalt.err (!%p1699_p8)
}
 0x41b   :  { %s1703_s11 = scalar_lea.hbm %s2473_s7, 3072 }
 0x41c   :  { %p1704_p9 = scmp.ne.s32.totalorder %s2473_s7, %s1703_s11  ;;  %p1707_p10 = scmp.lt.u32.totalorder %s1703_s11, %s2473_s7 }
 0x41e   :  { %p1709_p11 = pnand %p1707_p10, %p1704_p9 }
 0x420   :  { %1712 = shalt.err (!%p1709_p11)
}
 0x421   :  { %1236 = dma.vmem_to_hbm [thread:$0]  %s1231_s30, 3072, %s2473_s7, [#allocation4], %s1726_s0, %s1726_s0, %s1727_s27  }
 0x422   :  { %1719 = dma.done.wait [#allocation4], 3072  }
 0x423   :  { %1720 = vsyncadd [#allocation4], 4294964224 }
 0x424   :  { %1240 = vsyncpa [#allocation3], 1 }
 0x425   :  { %1241 = vsyncpa [#allocation6], 1 }
 0x426   :  { %1242 = vsyncpa [#allocation9], 1 }
 0x427   :  { %1243 = vsyncpa [#allocation4], 1 }

</bundles_post_ra>
